<compile_context>
chip_gen: v5e
topology: v5e:2x2
jax: 0.10.0
libtpu: 0.0.40
codegen_flags: <defaults>
</compile_context>

<pallas_src>
import jax
import jax.numpy as jnp
from jax.experimental import pallas as pl
from jax.experimental.pallas import tpu as pltpu

# Feature widths (2F = 2G = 128 -> lane-dense stacked heads).
C1, C2, F, G, H = 32, 64, 64, 64, 64
N_ITERS = 4


# ---------------------------------------------------------------------------
# Fused per-iteration kernel (runs 4x via grid=(4,), state carried in VMEM)
# ---------------------------------------------------------------------------

def _net_kernel(src_ref, ref_ref,
                w1_ref, b1_ref, w2_ref, b2_ref, wh_ref, bh_ref,
                wf_ref, bf_ref, wq1_ref, bq1_ref, wq2_ref, bq2_ref,
                wt1_ref, bt1_ref, wt2_ref, bt2_ref,
                xform_ref, pose_ref,
                xyz_sc, pose_sc):
    it = pl.program_id(0)
    B, N, _ = src_ref.shape
    Fh = wh_ref.shape[2] // 2          # encoder head width per branch
    Gf = wf_ref.shape[2] // 2          # fusion width per branch

    @pl.when(it == 0)
    def _init():
        xyz_sc[...] = src_ref[...]
        lane = jax.lax.broadcasted_iota(jnp.int32, pose_sc.shape, 1)
        pose_sc[...] = (lane == 0).astype(jnp.float32)   # identity pose [1,0,0,0, 0,0,0]

    xs = xyz_sc[...]                   # (B, N, 3) current source points (carried)
    xr = ref_ref[...]                  # (B, N, 3) reference points (constant)

    # ---------------- Encoder: shared per-point MLP (flattened 2-D matmuls) --
    pts = jnp.concatenate([xs[b] for b in range(B)] +
                          [xr[b] for b in range(B)], axis=0)          # (2BN, 3)
    h1 = jnp.maximum(
        jnp.dot(pts, w1_ref[0], preferred_element_type=jnp.float32) + b1_ref[0], 0.0)
    h2 = jnp.maximum(
        jnp.dot(h1, w2_ref[0], preferred_element_type=jnp.float32) + b2_ref[0], 0.0)

    # Per-cloud max-pool (N is a multiple of 8 -> aligned sublane slices).
    def pool(cloud):
        return jnp.max(h2[cloud * N:(cloud + 1) * N], axis=0, keepdims=True)  # (1, C2)

    row = jax.lax.broadcasted_iota(jnp.int32, (B, h2.shape[1]), 0)
    g_src = jnp.zeros((B, h2.shape[1]), jnp.float32)
    g_ref = jnp.zeros((B, h2.shape[1]), jnp.float32)
    for b in range(B):
        g_src = jnp.where(row == b, pool(b), g_src)
        g_ref = jnp.where(row == b, pool(B + b), g_ref)

    # Stacked [R | t] encoder head: one lane-dense (C2, 2F) matmul per cloud set.
    heads_src = jnp.maximum(
        jnp.dot(g_src, wh_ref[0], preferred_element_type=jnp.float32) + bh_ref[0], 0.0)
    heads_ref = jnp.maximum(
        jnp.dot(g_ref, wh_ref[0], preferred_element_type=jnp.float32) + bh_ref[0], 0.0)
    enc_src_R, enc_src_t = heads_src[:, :Fh], heads_src[:, Fh:]
    enc_ref_R, enc_ref_t = heads_ref[:, :Fh], heads_ref[:, Fh:]

    # ---------------- Fusion (block-diagonal [R | t] weight, 128-lane out) ---
    src_R_cat = jnp.concatenate([enc_src_R, enc_ref_R], axis=-1)       # (B, 2F)
    ref_R_cat = jnp.concatenate([enc_ref_R, enc_src_R], axis=-1)
    src_t_cat = jnp.concatenate([enc_src_t, enc_ref_t], axis=-1)
    ref_t_cat = jnp.concatenate([enc_ref_t, enc_src_t], axis=-1)

    src_fin = jnp.concatenate([src_R_cat, src_t_cat], axis=-1)         # (B, 4F)
    ref_fin = jnp.concatenate([ref_R_cat, ref_t_cat], axis=-1)
    fused_src = jnp.maximum(
        jnp.dot(src_fin, wf_ref[0], preferred_element_type=jnp.float32) + bf_ref[0], 0.0)
    fused_ref = jnp.maximum(
        jnp.dot(ref_fin, wf_ref[0], preferred_element_type=jnp.float32) + bf_ref[0], 0.0)
    src_R_feat, src_t_feat = fused_src[:, :Gf], fused_src[:, Gf:]
    ref_R_feat, ref_t_feat = fused_ref[:, :Gf], fused_ref[:, Gf:]

    # ---------------- Regression heads ---------------------------------------
    R_feats = jnp.concatenate(
        [src_t_feat, src_R_feat, ref_t_feat, ref_R_feat], axis=-1)      # (B, 4G)
    src_t_feats = jnp.concatenate([src_t_feat, src_R_feat, ref_t_feat], axis=-1)
    ref_t_feats = jnp.concatenate([ref_t_feat, ref_R_feat, src_t_feat], axis=-1)

    hq = jnp.maximum(
        jnp.dot(R_feats, wq1_ref[0], preferred_element_type=jnp.float32) + bq1_ref[0], 0.0)
    pred_quat = jnp.dot(hq, wq2_ref[0], preferred_element_type=jnp.float32) + bq2_ref[0]

    hs = jnp.maximum(
        jnp.dot(src_t_feats, wt1_ref[0], preferred_element_type=jnp.float32) + bt1_ref[0], 0.0)
    src_center = jnp.dot(hs, wt2_ref[0], preferred_element_type=jnp.float32) + bt2_ref[0]
    hr = jnp.maximum(
        jnp.dot(ref_t_feats, wt1_ref[0], preferred_element_type=jnp.float32) + bt1_ref[0], 0.0)
    ref_center = jnp.dot(hr, wt2_ref[0], preferred_element_type=jnp.float32) + bt2_ref[0]
    pred_translate = ref_center - src_center                            # (B, 3)

    # ---------------- Quaternion -> rotation entries -------------------------
    qn = pred_quat * jax.lax.rsqrt(
        jnp.sum(pred_quat * pred_quat, axis=-1, keepdims=True))
    qw, qx, qy, qz = qn[:, 0:1], qn[:, 1:2], qn[:, 2:3], qn[:, 3:4]
    r00 = 1.0 - 2.0 * (qy * qy + qz * qz)
    r01 = 2.0 * (qx * qy - qw * qz)
    r02 = 2.0 * (qx * qz + qw * qy)
    r10 = 2.0 * (qx * qy + qw * qz)
    r11 = 1.0 - 2.0 * (qx * qx + qz * qz)
    r12 = 2.0 * (qy * qz - qw * qx)
    r20 = 2.0 * (qx * qz - qw * qy)
    r21 = 2.0 * (qy * qz + qw * qx)
    r22 = 1.0 - 2.0 * (qx * qx + qy * qy)

    lane3 = jax.lax.broadcasted_iota(jnp.int32, (B, 3), 1)

    def vec3(a, b_, c):                 # assemble [a, b, c] along the lane axis
        v = jnp.where(lane3 == 0, a, 0.0)
        v = jnp.where(lane3 == 1, b_, v)
        v = jnp.where(lane3 == 2, c, v)
        return v

    # ---------------- Rigid transform: p' = R p + t --------------------------
    col0 = vec3(r00, r10, r20)[:, None, :]                              # (B, 1, 3)
    col1 = vec3(r01, r11, r21)[:, None, :]
    col2 = vec3(r02, r12, r22)[:, None, :]
    t3 = pred_translate[:, None, :]                                     # (B, 1, 3)
    new_xyz = (xs[:, :, 0:1] * col0 + xs[:, :, 1:2] * col1
               + xs[:, :, 2:3] * col2) + t3                             # (B, N, 3)

    # ---------------- Pose composition: pose_new o pose_old ------------------
    prev = pose_sc[...]                                                 # (B, 7)
    q_old = prev[:, 0:4]
    q_old = q_old * jax.lax.rsqrt(jnp.sum(q_old * q_old, axis=-1, keepdims=True))
    ow, ox, oy, oz = q_old[:, 0:1], q_old[:, 1:2], q_old[:, 2:3], q_old[:, 3:4]
    cw = qw * ow - qx * ox - qy * oy - qz * oz
    cx = qw * ox + qx * ow + qy * oz - qz * oy
    cy = qw * oy - qx * oz + qy * ow + qz * ox
    cz = qw * oz + qx * oy - qy * ox + qz * ow
    tx, ty, tz = prev[:, 4:5], prev[:, 5:6], prev[:, 6:7]
    ntx = r00 * tx + r01 * ty + r02 * tz + pred_translate[:, 0:1]
    nty = r10 * tx + r11 * ty + r12 * tz + pred_translate[:, 1:2]
    ntz = r20 * tx + r21 * ty + r22 * tz + pred_translate[:, 2:3]

    lane7 = jax.lax.broadcasted_iota(jnp.int32, (B, 7), 1)
    new_pose = jnp.zeros((B, 7), jnp.float32)
    for k, part in enumerate((cw, cx, cy, cz, ntx, nty, ntz)):
        new_pose = jnp.where(lane7 == k, part, new_pose)

    # ---------------- Carry state & write this iteration's outputs -----------
    xyz_sc[...] = new_xyz
    pose_sc[...] = new_pose
    xform_ref[...] = new_xyz[None]
    pose_ref[...] = new_pose[None]


def _net_pallas(params, xyz_src, xyz_ref):
    B, N, _ = xyz_src.shape
    n_iter = params['w1'].shape[0]

    def wspec(arr):
        tail = arr.shape[1:]
        zeros = (0,) * len(tail)
        return pl.BlockSpec((1,) + tail, lambda i: (i,) + zeros)

    pts_spec = pl.BlockSpec((B, N, 3), lambda i: (0, 0, 0))

    names = ('w1', 'b1', 'w2', 'b2', 'wh', 'bh', 'wf', 'bf',
             'wq1', 'bq1', 'wq2', 'bq2', 'wt1', 'bt1', 'wt2', 'bt2')
    weights = [params[k] for k in names]

    grid_spec = pltpu.PrefetchScalarGridSpec(
        num_scalar_prefetch=0,
        grid=(n_iter,),
        in_specs=[pts_spec, pts_spec] + [wspec(w) for w in weights],
        out_specs=[
            pl.BlockSpec((1, B, N, 3), lambda i: (i, 0, 0, 0)),
            pl.BlockSpec((1, B, 7), lambda i: (i, 0, 0)),
        ],
        scratch_shapes=[pltpu.VMEM((B, N, 3), jnp.float32),
                        pltpu.VMEM((B, 7), jnp.float32)],
    )

    return pl.pallas_call(
        _net_kernel,
        grid_spec=grid_spec,
        out_shape=(jax.ShapeDtypeStruct((n_iter, B, N, 3), jnp.float32),
                   jax.ShapeDtypeStruct((n_iter, B, 7), jnp.float32)),
        compiler_params=pltpu.CompilerParams(
            dimension_semantics=("arbitrary",)),
    )(xyz_src, xyz_ref, *weights)


# ---------------------------------------------------------------------------
# Euler / translation normalization (tiny post-processing on (4, B, *) poses)
# TODO(synk): arcsin/arctan2 have no reliable Mosaic lowering, so quat2euler
# stays in plain JAX on the kernel's pose outputs.
# ---------------------------------------------------------------------------

def quat2euler_zyx(q):
    min_values = jnp.array([[-14.3309, -14.3309, -14.3309]], jnp.float32)
    max_values = jnp.array([[10.7794, 10.7794, 10.7794]], jnp.float32)
    qw, qx, qy, qz = q[..., 0], q[..., 1], q[..., 2], q[..., 3]
    asin_input = -2.0 * (qx * qz - qw * qy)
    eps = jnp.finfo(q.dtype).eps
    mask = (asin_input >= 1 - 10 * eps) | (asin_input <= -1 + 10 * eps)
    asin_input = jnp.clip(asin_input, -1 + 10 * eps, 1 - 10 * eps)
    e0 = jnp.arctan2(2 * (qx * qy + qw * qz), qw ** 2 + qx ** 2 - qy ** 2 - qz ** 2)
    e1 = jnp.arcsin(asin_input)
    e2 = jnp.arctan2(2 * (qy * qz + qw * qx), qw ** 2 - qx ** 2 - qy ** 2 + qz ** 2)
    e0 = jnp.where(mask, -jnp.sign(asin_input) * 2.0 * jnp.arctan2(qx, qw), e0)
    e2 = jnp.where(mask, 0.0, e2)
    eul = jnp.stack([e0, e1, e2], axis=-1)
    euler_angles_deg = jnp.degrees(eul)
    return (euler_angles_deg - min_values) / (max_values - min_values)


# ---------------------------------------------------------------------------
# Deterministic parameter init (synthetic weights, stacked over 4 iterations)
# ---------------------------------------------------------------------------

def _linear(key, fan_in, fan_out):
    k1, k2 = jax.random.split(key)
    w = jax.random.normal(k1, (fan_in, fan_out), jnp.float32) / jnp.sqrt(float(fan_in))
    b = 0.01 * jax.random.normal(k2, (1, fan_out), jnp.float32)
    return w, b


def init_params(key):
    names = ('w1', 'b1', 'w2', 'b2', 'wh', 'bh', 'wf', 'bf',
             'wq1', 'bq1', 'wq2', 'bq2', 'wt1', 'bt1', 'wt2', 'bt2')
    stacks = {k: [] for k in names}
    for i in range(N_ITERS):
        keys = jax.random.split(jax.random.fold_in(key, i), 10)
        w1, b1 = _linear(keys[0], 3, C1)
        w2, b2 = _linear(keys[1], C1, C2)
        wR, bR = _linear(keys[2], C2, F)
        wt_, bt_ = _linear(keys[3], C2, F)
        fwR, fbR = _linear(keys[4], 2 * F, G)
        fwt, fbt = _linear(keys[5], 2 * F, G)
        wq1, bq1 = _linear(keys[6], 4 * G, H)
        wq2, bq2 = _linear(keys[7], H, 4)
        wt1, bt1 = _linear(keys[8], 3 * G, H)
        wt2, bt2 = _linear(keys[9], H, 3)

        # Stack the encoder R/t heads into one lane-dense (C2, 2F) matmul.
        wh = jnp.concatenate([wR, wt_], axis=1)
        bh = jnp.concatenate([bR, bt_], axis=1)
        # Block-diagonal fusion weight: [R_cat | t_cat] (4F) -> [R_feat | t_feat] (2G).
        zero = jnp.zeros((2 * F, G), jnp.float32)
        wf = jnp.concatenate(
            [jnp.concatenate([fwR, zero], axis=1),
             jnp.concatenate([zero, fwt], axis=1)], axis=0)
        bf = jnp.concatenate([fbR, fbt], axis=1)

        vals = dict(w1=w1, b1=b1, w2=w2, b2=b2, wh=wh, bh=bh, wf=wf, bf=bf,
                    wq1=wq1, bq1=bq1, wq2=wq2, bq2=bq2,
                    wt1=wt1, bt1=bt1, wt2=wt2, bt2=bt2)
        for k in names:
            stacks[k].append(vals[k])
    return {k: jnp.stack(v, axis=0) for k, v in stacks.items()}


# ---------------------------------------------------------------------------
# Net.forward
# ---------------------------------------------------------------------------

def net_forward(params, coarse, batch_db):
    xyz_src = coarse[:, :, :3]
    xyz_ref = batch_db[:, :, :3]

    transforms_all, poses_all = _net_pallas(params, xyz_src, xyz_ref)
    quats = poses_all[:, :, :4]                                     # (4, B, 4)
    trans = poses_all[:, :, 4:]                                     # (4, B, 3)

    min_trans = jnp.array([[-0.0461, -0.0461, -0.0461]], jnp.float32)
    max_trans = jnp.array([[0.044, 0.044, 0.044]], jnp.float32)

    eulers_all = quat2euler_zyx(quats)                              # (4, B, 3)
    dists_all = (trans - min_trans) / (max_trans - min_trans)       # (4, B, 3)

    n_iter = quats.shape[0]
    translations = [dists_all[i] for i in range(n_iter)]
    transforms = [transforms_all[i] for i in range(n_iter)]
    eulers = [eulers_all[i] for i in range(n_iter)]
    rotations = [quats[i] for i in range(n_iter)]
    return translations, transforms, eulers, rotations


# ---------------------------------------------------------------------------

if __name__ == "__main__":
    key = jax.random.PRNGKey(0)
    k1, k2, kp = jax.random.split(key, 3)

    B, N = 2, 16
    coarse = jax.random.normal(k1, (B, N, 3), jnp.float32)
    batch_db = jax.random.normal(k2, (B, N, 3), jnp.float32)
    params = init_params(kp)

    fwd = jax.jit(net_forward)
    out = fwd(params, coarse, batch_db)
    jax.block_until_ready(out)

    translations, transforms, eulers, rotations = out
    assert len(translations) == 4 and translations[0].shape == (B, 3)
    assert transforms[0].shape == (B, N, 3)
    assert eulers[0].shape == (B, 3)
    assert rotations[0].shape == (B, 4)
    print("KERNEL_OK")
</pallas_src>

<mosaic_0001>
module attributes {stable_mosaic.version = 11 : i64} {
  func.func @_net_kernel(%arg0: i32, %arg1: memref<2x16x3xf32, #tpu.memory_space<vmem>>, %arg2: memref<2x16x3xf32, #tpu.memory_space<vmem>>, %arg3: memref<1x3x32xf32, #tpu.memory_space<vmem>>, %arg4: memref<1x1x32xf32, #tpu.memory_space<vmem>>, %arg5: memref<1x32x64xf32, #tpu.memory_space<vmem>>, %arg6: memref<1x1x64xf32, #tpu.memory_space<vmem>>, %arg7: memref<1x64x128xf32, #tpu.memory_space<vmem>>, %arg8: memref<1x1x128xf32, #tpu.memory_space<vmem>>, %arg9: memref<1x256x128xf32, #tpu.memory_space<vmem>>, %arg10: memref<1x1x128xf32, #tpu.memory_space<vmem>>, %arg11: memref<1x256x64xf32, #tpu.memory_space<vmem>>, %arg12: memref<1x1x64xf32, #tpu.memory_space<vmem>>, %arg13: memref<1x64x4xf32, #tpu.memory_space<vmem>>, %arg14: memref<1x1x4xf32, #tpu.memory_space<vmem>>, %arg15: memref<1x192x64xf32, #tpu.memory_space<vmem>>, %arg16: memref<1x1x64xf32, #tpu.memory_space<vmem>>, %arg17: memref<1x64x3xf32, #tpu.memory_space<vmem>>, %arg18: memref<1x1x3xf32, #tpu.memory_space<vmem>>, %arg19: memref<1x2x16x3xf32, #tpu.memory_space<vmem>>, %arg20: memref<1x2x7xf32, #tpu.memory_space<vmem>>, %arg21: memref<2x16x3xf32, #tpu.memory_space<vmem>>, %arg22: memref<2x7xf32, #tpu.memory_space<vmem>>) attributes {dimension_semantics = [#tpu.dimension_semantics<arbitrary>], iteration_bounds = array<i64: 4>, scalar_prefetch = 0 : i64, scratch_operands = 2 : i64, tpu.core_type = #tpu.core_type<tc>, window_params = [{pipeline_mode = #tpu.pipeline_mode<synchronous>, transform_indices = @transform_0, window_bounds = array<i64: 2, 16, 3>}, {pipeline_mode = #tpu.pipeline_mode<synchronous>, transform_indices = @transform_1, window_bounds = array<i64: 2, 16, 3>}, {transform_indices = @transform_2, window_bounds = array<i64: 1, 3, 32>}, {transform_indices = @transform_3, window_bounds = array<i64: 1, 1, 32>}, {transform_indices = @transform_4, window_bounds = array<i64: 1, 32, 64>}, {transform_indices = @transform_5, window_bounds = array<i64: 1, 1, 64>}, {transform_indices = @transform_6, window_bounds = array<i64: 1, 64, 128>}, {transform_indices = @transform_7, window_bounds = array<i64: 1, 1, 128>}, {transform_indices = @transform_8, window_bounds = array<i64: 1, 256, 128>}, {transform_indices = @transform_9, window_bounds = array<i64: 1, 1, 128>}, {transform_indices = @transform_10, window_bounds = array<i64: 1, 256, 64>}, {transform_indices = @transform_11, window_bounds = array<i64: 1, 1, 64>}, {transform_indices = @transform_12, window_bounds = array<i64: 1, 64, 4>}, {transform_indices = @transform_13, window_bounds = array<i64: 1, 1, 4>}, {transform_indices = @transform_14, window_bounds = array<i64: 1, 192, 64>}, {transform_indices = @transform_15, window_bounds = array<i64: 1, 1, 64>}, {transform_indices = @transform_16, window_bounds = array<i64: 1, 64, 3>}, {transform_indices = @transform_17, window_bounds = array<i64: 1, 1, 3>}, {transform_indices = @transform_18, window_bounds = array<i64: 1, 2, 16, 3>}, {transform_indices = @transform_19, window_bounds = array<i64: 1, 2, 7>}]} {
    %c0_i32 = arith.constant 0 : i32
    %0 = arith.cmpi eq, %arg0, %c0_i32 : i32
    %1 = arith.extui %0 : i1 to i32
    %c0_i32_0 = arith.constant 0 : i32
    %2 = arith.cmpi ne, %1, %c0_i32_0 : i32
    scf.if %2 {
      %c0_150 = arith.constant 0 : index
      %c0_151 = arith.constant 0 : index
      %c0_152 = arith.constant 0 : index
      %406 = vector.load %arg1[%c0_150, %c0_151, %c0_152] : memref<2x16x3xf32, #tpu.memory_space<vmem>>, vector<2x16x3xf32>
      %c0_153 = arith.constant 0 : index
      %c0_154 = arith.constant 0 : index
      %c0_155 = arith.constant 0 : index
      %407 = vector.load %arg21[%c0_153, %c0_154, %c0_155] : memref<2x16x3xf32, #tpu.memory_space<vmem>>, vector<2x16x3xf32>
      tpu.vector_store %arg21[%c0_153, %c0_154, %c0_155], %406 {strides = array<i32>} : memref<2x16x3xf32, #tpu.memory_space<vmem>>, vector<2x16x3xf32>,
      %408 = tpu.iota {dimensions = array<i32: 1>} : vector<2x7xi32>
      %c0_i32_156 = arith.constant 0 : i32
      %409 = vector.broadcast %c0_i32_156 : i32 to vector<2x7xi32>
      %410 = arith.cmpi eq, %408, %409 : vector<2x7xi32>
      %411 = arith.extui %410 : vector<2x7xi1> to vector<2x7xi32>
      %412 = arith.sitofp %411 : vector<2x7xi32> to vector<2x7xf32>
      %c0_157 = arith.constant 0 : index
      %c0_158 = arith.constant 0 : index
      %413 = vector.load %arg22[%c0_157, %c0_158] : memref<2x7xf32, #tpu.memory_space<vmem>>, vector<2x7xf32>
      tpu.vector_store %arg22[%c0_157, %c0_158], %412 {strides = array<i32>} : memref<2x7xf32, #tpu.memory_space<vmem>>, vector<2x7xf32>,
    } else {
    }
    %c0 = arith.constant 0 : index
    %c0_1 = arith.constant 0 : index
    %c0_2 = arith.constant 0 : index
    %3 = vector.load %arg21[%c0, %c0_1, %c0_2] : memref<2x16x3xf32, #tpu.memory_space<vmem>>, vector<2x16x3xf32>
    %c0_3 = arith.constant 0 : index
    %c0_4 = arith.constant 0 : index
    %c0_5 = arith.constant 0 : index
    %4 = vector.load %arg2[%c0_3, %c0_4, %c0_5] : memref<2x16x3xf32, #tpu.memory_space<vmem>>, vector<2x16x3xf32>
    %5 = vector.extract_strided_slice %3 {offsets = [0, 0, 0], sizes = [1, 16, 3], strides = [1, 1, 1]} : vector<2x16x3xf32> to vector<1x16x3xf32>
    %6 = vector.shape_cast %5 : vector<1x16x3xf32> to vector<16x3xf32>
    %7 = vector.extract_strided_slice %3 {offsets = [1, 0, 0], sizes = [1, 16, 3], strides = [1, 1, 1]} : vector<2x16x3xf32> to vector<1x16x3xf32>
    %8 = vector.shape_cast %7 : vector<1x16x3xf32> to vector<16x3xf32>
    %9 = vector.extract_strided_slice %4 {offsets = [0, 0, 0], sizes = [1, 16, 3], strides = [1, 1, 1]} : vector<2x16x3xf32> to vector<1x16x3xf32>
    %10 = vector.shape_cast %9 : vector<1x16x3xf32> to vector<16x3xf32>
    %11 = vector.extract_strided_slice %4 {offsets = [1, 0, 0], sizes = [1, 16, 3], strides = [1, 1, 1]} : vector<2x16x3xf32> to vector<1x16x3xf32>
    %12 = vector.shape_cast %11 : vector<1x16x3xf32> to vector<16x3xf32>
    %13 = tpu.concatenate %6, %8, %10, %12 in 0 : vector<16x3xf32>, vector<16x3xf32>, vector<16x3xf32>, vector<16x3xf32> -> vector<64x3xf32>
    %c0_6 = arith.constant 0 : index
    %c0_7 = arith.constant 0 : index
    %c0_8 = arith.constant 0 : index
    %14 = vector.load %arg3[%c0_6, %c0_7, %c0_8] : memref<1x3x32xf32, #tpu.memory_space<vmem>>, vector<1x3x32xf32>
    %15 = vector.shape_cast %14 : vector<1x3x32xf32> to vector<3x32xf32>
    %cst = arith.constant dense<0.000000e+00> : vector<64x32xf32>
    %16 = tpu.matmul %13, %15, %cst {dimension_numbers = #tpu.dot_dimension_numbers<[1], [0], [0], [1], [0, 0, 1, 1], [], []>} : vector<64x3xf32>, vector<3x32xf32>, vector<64x32xf32> -> vector<64x32xf32>
    %c0_9 = arith.constant 0 : index
    %c0_10 = arith.constant 0 : index
    %c0_11 = arith.constant 0 : index
    %17 = vector.load %arg4[%c0_9, %c0_10, %c0_11] : memref<1x1x32xf32, #tpu.memory_space<vmem>>, vector<1x1x32xf32>
    %18 = vector.shape_cast %17 : vector<1x1x32xf32> to vector<1x32xf32>
    %19 = vector.broadcast %18 : vector<1x32xf32> to vector<64x32xf32>
    %20 = arith.addf %16, %19 : vector<64x32xf32>
    %cst_12 = arith.constant 0.000000e+00 : f32
    %21 = vector.broadcast %cst_12 : f32 to vector<64x32xf32>
    %22 = arith.maximumf %20, %21 : vector<64x32xf32>
    %c0_13 = arith.constant 0 : index
    %c0_14 = arith.constant 0 : index
    %c0_15 = arith.constant 0 : index
    %23 = vector.load %arg5[%c0_13, %c0_14, %c0_15] : memref<1x32x64xf32, #tpu.memory_space<vmem>>, vector<1x32x64xf32>
    %24 = vector.shape_cast %23 : vector<1x32x64xf32> to vector<32x64xf32>
    %cst_16 = arith.constant dense<0.000000e+00> : vector<64x64xf32>
    %25 = tpu.matmul %22, %24, %cst_16 {dimension_numbers = #tpu.dot_dimension_numbers<[1], [0], [0], [1], [0, 0, 1, 1], [], []>} : vector<64x32xf32>, vector<32x64xf32>, vector<64x64xf32> -> vector<64x64xf32>
    %c0_17 = arith.constant 0 : index
    %c0_18 = arith.constant 0 : index
    %c0_19 = arith.constant 0 : index
    %26 = vector.load %arg6[%c0_17, %c0_18, %c0_19] : memref<1x1x64xf32, #tpu.memory_space<vmem>>, vector<1x1x64xf32>
    %27 = vector.shape_cast %26 : vector<1x1x64xf32> to vector<1x64xf32>
    %28 = vector.broadcast %27 : vector<1x64xf32> to vector<64x64xf32>
    %29 = arith.addf %25, %28 : vector<64x64xf32>
    %cst_20 = arith.constant 0.000000e+00 : f32
    %30 = vector.broadcast %cst_20 : f32 to vector<64x64xf32>
    %31 = arith.maximumf %29, %30 : vector<64x64xf32>
    %32 = tpu.iota {dimensions = array<i32: 0>} : vector<2x64xi32>
    %cst_21 = arith.constant 0.000000e+00 : f32
    %33 = vector.broadcast %cst_21 : f32 to vector<2x64xf32>
    %cst_22 = arith.constant 0.000000e+00 : f32
    %34 = vector.broadcast %cst_22 : f32 to vector<2x64xf32>
    %c0_i32_23 = arith.constant 0 : i32
    %35 = vector.broadcast %c0_i32_23 : i32 to vector<2x64xi32>
    %36 = arith.cmpi eq, %32, %35 : vector<2x64xi32>
    %37 = vector.extract_strided_slice %31 {offsets = [0, 0], sizes = [16, 64], strides = [1, 1]} : vector<64x64xf32> to vector<16x64xf32>
    %cst_24 = arith.constant dense<0xFF800000> : vector<64xf32>
    %38 = vector.multi_reduction <maximumf>, %37, %cst_24 [0] : vector<16x64xf32> to vector<64xf32>
    %39 = vector.shape_cast %38 : vector<64xf32> to vector<1x64xf32>
    %40 = vector.shape_cast %39 : vector<1x64xf32> to vector<1x64xf32>
    %41 = vector.broadcast %40 : vector<1x64xf32> to vector<2x64xf32>
    %42 = arith.select %36, %41, %33 : vector<2x64xi1>, vector<2x64xf32>
    %c0_i32_25 = arith.constant 0 : i32
    %43 = vector.broadcast %c0_i32_25 : i32 to vector<2x64xi32>
    %44 = arith.cmpi eq, %32, %43 : vector<2x64xi32>
    %45 = vector.extract_strided_slice %31 {offsets = [32, 0], sizes = [16, 64], strides = [1, 1]} : vector<64x64xf32> to vector<16x64xf32>
    %cst_26 = arith.constant dense<0xFF800000> : vector<64xf32>
    %46 = vector.multi_reduction <maximumf>, %45, %cst_26 [0] : vector<16x64xf32> to vector<64xf32>
    %47 = vector.shape_cast %46 : vector<64xf32> to vector<1x64xf32>
    %48 = vector.shape_cast %47 : vector<1x64xf32> to vector<1x64xf32>
    %49 = vector.broadcast %48 : vector<1x64xf32> to vector<2x64xf32>
    %50 = arith.select %44, %49, %34 : vector<2x64xi1>, vector<2x64xf32>
    %c1_i32 = arith.constant 1 : i32
    %51 = vector.broadcast %c1_i32 : i32 to vector<2x64xi32>
    %52 = arith.cmpi eq, %32, %51 : vector<2x64xi32>
    %53 = vector.extract_strided_slice %31 {offsets = [16, 0], sizes = [16, 64], strides = [1, 1]} : vector<64x64xf32> to vector<16x64xf32>
    %cst_27 = arith.constant dense<0xFF800000> : vector<64xf32>
    %54 = vector.multi_reduction <maximumf>, %53, %cst_27 [0] : vector<16x64xf32> to vector<64xf32>
    %55 = vector.shape_cast %54 : vector<64xf32> to vector<1x64xf32>
    %56 = vector.shape_cast %55 : vector<1x64xf32> to vector<1x64xf32>
    %57 = vector.broadcast %56 : vector<1x64xf32> to vector<2x64xf32>
    %58 = arith.select %52, %57, %42 : vector<2x64xi1>, vector<2x64xf32>
    %c1_i32_28 = arith.constant 1 : i32
    %59 = vector.broadcast %c1_i32_28 : i32 to vector<2x64xi32>
    %60 = arith.cmpi eq, %32, %59 : vector<2x64xi32>
    %61 = vector.extract_strided_slice %31 {offsets = [48, 0], sizes = [16, 64], strides = [1, 1]} : vector<64x64xf32> to vector<16x64xf32>
    %cst_29 = arith.constant dense<0xFF800000> : vector<64xf32>
    %62 = vector.multi_reduction <maximumf>, %61, %cst_29 [0] : vector<16x64xf32> to vector<64xf32>
    %63 = vector.shape_cast %62 : vector<64xf32> to vector<1x64xf32>
    %64 = vector.shape_cast %63 : vector<1x64xf32> to vector<1x64xf32>
    %65 = vector.broadcast %64 : vector<1x64xf32> to vector<2x64xf32>
    %66 = arith.select %60, %65, %50 : vector<2x64xi1>, vector<2x64xf32>
    %c0_30 = arith.constant 0 : index
    %c0_31 = arith.constant 0 : index
    %c0_32 = arith.constant 0 : index
    %67 = vector.load %arg7[%c0_30, %c0_31, %c0_32] : memref<1x64x128xf32, #tpu.memory_space<vmem>>, vector<1x64x128xf32>
    %68 = vector.shape_cast %67 : vector<1x64x128xf32> to vector<64x128xf32>
    %cst_33 = arith.constant dense<0.000000e+00> : vector<2x128xf32>
    %69 = tpu.matmul %58, %68, %cst_33 {dimension_numbers = #tpu.dot_dimension_numbers<[1], [0], [0], [1], [0, 0, 1, 1], [], []>} : vector<2x64xf32>, vector<64x128xf32>, vector<2x128xf32> -> vector<2x128xf32>
    %c0_34 = arith.constant 0 : index
    %c0_35 = arith.constant 0 : index
    %c0_36 = arith.constant 0 : index
    %70 = vector.load %arg8[%c0_34, %c0_35, %c0_36] : memref<1x1x128xf32, #tpu.memory_space<vmem>>, vector<1x1x128xf32>
    %71 = vector.shape_cast %70 : vector<1x1x128xf32> to vector<1x128xf32>
    %72 = vector.broadcast %71 : vector<1x128xf32> to vector<2x128xf32>
    %73 = arith.addf %69, %72 : vector<2x128xf32>
    %cst_37 = arith.constant 0.000000e+00 : f32
    %74 = vector.broadcast %cst_37 : f32 to vector<2x128xf32>
    %75 = arith.maximumf %73, %74 : vector<2x128xf32>
    %c0_38 = arith.constant 0 : index
    %c0_39 = arith.constant 0 : index
    %c0_40 = arith.constant 0 : index
    %76 = vector.load %arg7[%c0_38, %c0_39, %c0_40] : memref<1x64x128xf32, #tpu.memory_space<vmem>>, vector<1x64x128xf32>
    %77 = vector.shape_cast %76 : vector<1x64x128xf32> to vector<64x128xf32>
    %cst_41 = arith.constant dense<0.000000e+00> : vector<2x128xf32>
    %78 = tpu.matmul %66, %77, %cst_41 {dimension_numbers = #tpu.dot_dimension_numbers<[1], [0], [0], [1], [0, 0, 1, 1], [], []>} : vector<2x64xf32>, vector<64x128xf32>, vector<2x128xf32> -> vector<2x128xf32>
    %c0_42 = arith.constant 0 : index
    %c0_43 = arith.constant 0 : index
    %c0_44 = arith.constant 0 : index
    %79 = vector.load %arg8[%c0_42, %c0_43, %c0_44] : memref<1x1x128xf32, #tpu.memory_space<vmem>>, vector<1x1x128xf32>
    %80 = vector.shape_cast %79 : vector<1x1x128xf32> to vector<1x128xf32>
    %81 = vector.broadcast %80 : vector<1x128xf32> to vector<2x128xf32>
    %82 = arith.addf %78, %81 : vector<2x128xf32>
    %cst_45 = arith.constant 0.000000e+00 : f32
    %83 = vector.broadcast %cst_45 : f32 to vector<2x128xf32>
    %84 = arith.maximumf %82, %83 : vector<2x128xf32>
    %85 = vector.extract_strided_slice %75 {offsets = [0, 0], sizes = [2, 64], strides = [1, 1]} : vector<2x128xf32> to vector<2x64xf32>
    %86 = vector.extract_strided_slice %75 {offsets = [0, 64], sizes = [2, 64], strides = [1, 1]} : vector<2x128xf32> to vector<2x64xf32>
    %87 = vector.extract_strided_slice %84 {offsets = [0, 0], sizes = [2, 64], strides = [1, 1]} : vector<2x128xf32> to vector<2x64xf32>
    %88 = vector.extract_strided_slice %84 {offsets = [0, 64], sizes = [2, 64], strides = [1, 1]} : vector<2x128xf32> to vector<2x64xf32>
    %89 = tpu.concatenate %85, %87 in 1 : vector<2x64xf32>, vector<2x64xf32> -> vector<2x128xf32>
    %90 = tpu.concatenate %87, %85 in 1 : vector<2x64xf32>, vector<2x64xf32> -> vector<2x128xf32>
    %91 = tpu.concatenate %86, %88 in 1 : vector<2x64xf32>, vector<2x64xf32> -> vector<2x128xf32>
    %92 = tpu.concatenate %88, %86 in 1 : vector<2x64xf32>, vector<2x64xf32> -> vector<2x128xf32>
    %93 = tpu.concatenate %89, %91 in 1 : vector<2x128xf32>, vector<2x128xf32> -> vector<2x256xf32>
    %94 = tpu.concatenate %90, %92 in 1 : vector<2x128xf32>, vector<2x128xf32> -> vector<2x256xf32>
    %c0_46 = arith.constant 0 : index
    %c0_47 = arith.constant 0 : index
    %c0_48 = arith.constant 0 : index
    %95 = vector.load %arg9[%c0_46, %c0_47, %c0_48] : memref<1x256x128xf32, #tpu.memory_space<vmem>>, vector<1x256x128xf32>
    %96 = vector.shape_cast %95 : vector<1x256x128xf32> to vector<256x128xf32>
    %cst_49 = arith.constant dense<0.000000e+00> : vector<2x128xf32>
    %97 = tpu.matmul %93, %96, %cst_49 {dimension_numbers = #tpu.dot_dimension_numbers<[1], [0], [0], [1], [0, 0, 1, 1], [], []>} : vector<2x256xf32>, vector<256x128xf32>, vector<2x128xf32> -> vector<2x128xf32>
    %c0_50 = arith.constant 0 : index
    %c0_51 = arith.constant 0 : index
    %c0_52 = arith.constant 0 : index
    %98 = vector.load %arg10[%c0_50, %c0_51, %c0_52] : memref<1x1x128xf32, #tpu.memory_space<vmem>>, vector<1x1x128xf32>
    %99 = vector.shape_cast %98 : vector<1x1x128xf32> to vector<1x128xf32>
    %100 = vector.broadcast %99 : vector<1x128xf32> to vector<2x128xf32>
    %101 = arith.addf %97, %100 : vector<2x128xf32>
    %cst_53 = arith.constant 0.000000e+00 : f32
    %102 = vector.broadcast %cst_53 : f32 to vector<2x128xf32>
    %103 = arith.maximumf %101, %102 : vector<2x128xf32>
    %c0_54 = arith.constant 0 : index
    %c0_55 = arith.constant 0 : index
    %c0_56 = arith.constant 0 : index
    %104 = vector.load %arg9[%c0_54, %c0_55, %c0_56] : memref<1x256x128xf32, #tpu.memory_space<vmem>>, vector<1x256x128xf32>
    %105 = vector.shape_cast %104 : vector<1x256x128xf32> to vector<256x128xf32>
    %cst_57 = arith.constant dense<0.000000e+00> : vector<2x128xf32>
    %106 = tpu.matmul %94, %105, %cst_57 {dimension_numbers = #tpu.dot_dimension_numbers<[1], [0], [0], [1], [0, 0, 1, 1], [], []>} : vector<2x256xf32>, vector<256x128xf32>, vector<2x128xf32> -> vector<2x128xf32>
    %c0_58 = arith.constant 0 : index
    %c0_59 = arith.constant 0 : index
    %c0_60 = arith.constant 0 : index
    %107 = vector.load %arg10[%c0_58, %c0_59, %c0_60] : memref<1x1x128xf32, #tpu.memory_space<vmem>>, vector<1x1x128xf32>
    %108 = vector.shape_cast %107 : vector<1x1x128xf32> to vector<1x128xf32>
    %109 = vector.broadcast %108 : vector<1x128xf32> to vector<2x128xf32>
    %110 = arith.addf %106, %109 : vector<2x128xf32>
    %cst_61 = arith.constant 0.000000e+00 : f32
    %111 = vector.broadcast %cst_61 : f32 to vector<2x128xf32>
    %112 = arith.maximumf %110, %111 : vector<2x128xf32>
    %113 = vector.extract_strided_slice %103 {offsets = [0, 0], sizes = [2, 64], strides = [1, 1]} : vector<2x128xf32> to vector<2x64xf32>
    %114 = vector.extract_strided_slice %103 {offsets = [0, 64], sizes = [2, 64], strides = [1, 1]} : vector<2x128xf32> to vector<2x64xf32>
    %115 = vector.extract_strided_slice %112 {offsets = [0, 0], sizes = [2, 64], strides = [1, 1]} : vector<2x128xf32> to vector<2x64xf32>
    %116 = vector.extract_strided_slice %112 {offsets = [0, 64], sizes = [2, 64], strides = [1, 1]} : vector<2x128xf32> to vector<2x64xf32>
    %117 = tpu.concatenate %114, %113, %116, %115 in 1 : vector<2x64xf32>, vector<2x64xf32>, vector<2x64xf32>, vector<2x64xf32> -> vector<2x256xf32>
    %118 = tpu.concatenate %114, %113, %116 in 1 : vector<2x64xf32>, vector<2x64xf32>, vector<2x64xf32> -> vector<2x192xf32>
    %119 = tpu.concatenate %116, %115, %114 in 1 : vector<2x64xf32>, vector<2x64xf32>, vector<2x64xf32> -> vector<2x192xf32>
    %c0_62 = arith.constant 0 : index
    %c0_63 = arith.constant 0 : index
    %c0_64 = arith.constant 0 : index
    %120 = vector.load %arg11[%c0_62, %c0_63, %c0_64] : memref<1x256x64xf32, #tpu.memory_space<vmem>>, vector<1x256x64xf32>
    %121 = vector.shape_cast %120 : vector<1x256x64xf32> to vector<256x64xf32>
    %cst_65 = arith.constant dense<0.000000e+00> : vector<2x64xf32>
    %122 = tpu.matmul %117, %121, %cst_65 {dimension_numbers = #tpu.dot_dimension_numbers<[1], [0], [0], [1], [0, 0, 1, 1], [], []>} : vector<2x256xf32>, vector<256x64xf32>, vector<2x64xf32> -> vector<2x64xf32>
    %c0_66 = arith.constant 0 : index
    %c0_67 = arith.constant 0 : index
    %c0_68 = arith.constant 0 : index
    %123 = vector.load %arg12[%c0_66, %c0_67, %c0_68] : memref<1x1x64xf32, #tpu.memory_space<vmem>>, vector<1x1x64xf32>
    %124 = vector.shape_cast %123 : vector<1x1x64xf32> to vector<1x64xf32>
    %125 = vector.broadcast %124 : vector<1x64xf32> to vector<2x64xf32>
    %126 = arith.addf %122, %125 : vector<2x64xf32>
    %cst_69 = arith.constant 0.000000e+00 : f32
    %127 = vector.broadcast %cst_69 : f32 to vector<2x64xf32>
    %128 = arith.maximumf %126, %127 : vector<2x64xf32>
    %c0_70 = arith.constant 0 : index
    %c0_71 = arith.constant 0 : index
    %c0_72 = arith.constant 0 : index
    %129 = vector.load %arg13[%c0_70, %c0_71, %c0_72] : memref<1x64x4xf32, #tpu.memory_space<vmem>>, vector<1x64x4xf32>
    %130 = vector.shape_cast %129 : vector<1x64x4xf32> to vector<64x4xf32>
    %cst_73 = arith.constant dense<0.000000e+00> : vector<2x4xf32>
    %131 = tpu.matmul %128, %130, %cst_73 {dimension_numbers = #tpu.dot_dimension_numbers<[1], [0], [0], [1], [0, 0, 1, 1], [], []>} : vector<2x64xf32>, vector<64x4xf32>, vector<2x4xf32> -> vector<2x4xf32>
    %c0_74 = arith.constant 0 : index
    %c0_75 = arith.constant 0 : index
    %c0_76 = arith.constant 0 : index
    %132 = vector.load %arg14[%c0_74, %c0_75, %c0_76] : memref<1x1x4xf32, #tpu.memory_space<vmem>>, vector<1x1x4xf32>
    %133 = vector.shape_cast %132 : vector<1x1x4xf32> to vector<1x4xf32>
    %134 = vector.broadcast %133 : vector<1x4xf32> to vector<2x4xf32>
    %135 = arith.addf %131, %134 : vector<2x4xf32>
    %c0_77 = arith.constant 0 : index
    %c0_78 = arith.constant 0 : index
    %c0_79 = arith.constant 0 : index
    %136 = vector.load %arg15[%c0_77, %c0_78, %c0_79] : memref<1x192x64xf32, #tpu.memory_space<vmem>>, vector<1x192x64xf32>
    %137 = vector.shape_cast %136 : vector<1x192x64xf32> to vector<192x64xf32>
    %cst_80 = arith.constant dense<0.000000e+00> : vector<2x64xf32>
    %138 = tpu.matmul %118, %137, %cst_80 {dimension_numbers = #tpu.dot_dimension_numbers<[1], [0], [0], [1], [0, 0, 1, 1], [], []>} : vector<2x192xf32>, vector<192x64xf32>, vector<2x64xf32> -> vector<2x64xf32>
    %c0_81 = arith.constant 0 : index
    %c0_82 = arith.constant 0 : index
    %c0_83 = arith.constant 0 : index
    %139 = vector.load %arg16[%c0_81, %c0_82, %c0_83] : memref<1x1x64xf32, #tpu.memory_space<vmem>>, vector<1x1x64xf32>
    %140 = vector.shape_cast %139 : vector<1x1x64xf32> to vector<1x64xf32>
    %141 = vector.broadcast %140 : vector<1x64xf32> to vector<2x64xf32>
    %142 = arith.addf %138, %141 : vector<2x64xf32>
    %cst_84 = arith.constant 0.000000e+00 : f32
    %143 = vector.broadcast %cst_84 : f32 to vector<2x64xf32>
    %144 = arith.maximumf %142, %143 : vector<2x64xf32>
    %c0_85 = arith.constant 0 : index
    %c0_86 = arith.constant 0 : index
    %c0_87 = arith.constant 0 : index
    %145 = vector.load %arg17[%c0_85, %c0_86, %c0_87] : memref<1x64x3xf32, #tpu.memory_space<vmem>>, vector<1x64x3xf32>
    %146 = vector.shape_cast %145 : vector<1x64x3xf32> to vector<64x3xf32>
    %cst_88 = arith.constant dense<0.000000e+00> : vector<2x3xf32>
    %147 = tpu.matmul %144, %146, %cst_88 {dimension_numbers = #tpu.dot_dimension_numbers<[1], [0], [0], [1], [0, 0, 1, 1], [], []>} : vector<2x64xf32>, vector<64x3xf32>, vector<2x3xf32> -> vector<2x3xf32>
    %c0_89 = arith.constant 0 : index
    %c0_90 = arith.constant 0 : index
    %c0_91 = arith.constant 0 : index
    %148 = vector.load %arg18[%c0_89, %c0_90, %c0_91] : memref<1x1x3xf32, #tpu.memory_space<vmem>>, vector<1x1x3xf32>
    %149 = vector.shape_cast %148 : vector<1x1x3xf32> to vector<1x3xf32>
    %150 = vector.broadcast %149 : vector<1x3xf32> to vector<2x3xf32>
    %151 = arith.addf %147, %150 : vector<2x3xf32>
    %c0_92 = arith.constant 0 : index
    %c0_93 = arith.constant 0 : index
    %c0_94 = arith.constant 0 : index
    %152 = vector.load %arg15[%c0_92, %c0_93, %c0_94] : memref<1x192x64xf32, #tpu.memory_space<vmem>>, vector<1x192x64xf32>
    %153 = vector.shape_cast %152 : vector<1x192x64xf32> to vector<192x64xf32>
    %cst_95 = arith.constant dense<0.000000e+00> : vector<2x64xf32>
    %154 = tpu.matmul %119, %153, %cst_95 {dimension_numbers = #tpu.dot_dimension_numbers<[1], [0], [0], [1], [0, 0, 1, 1], [], []>} : vector<2x192xf32>, vector<192x64xf32>, vector<2x64xf32> -> vector<2x64xf32>
    %c0_96 = arith.constant 0 : index
    %c0_97 = arith.constant 0 : index
    %c0_98 = arith.constant 0 : index
    %155 = vector.load %arg16[%c0_96, %c0_97, %c0_98] : memref<1x1x64xf32, #tpu.memory_space<vmem>>, vector<1x1x64xf32>
    %156 = vector.shape_cast %155 : vector<1x1x64xf32> to vector<1x64xf32>
    %157 = vector.broadcast %156 : vector<1x64xf32> to vector<2x64xf32>
    %158 = arith.addf %154, %157 : vector<2x64xf32>
    %cst_99 = arith.constant 0.000000e+00 : f32
    %159 = vector.broadcast %cst_99 : f32 to vector<2x64xf32>
    %160 = arith.maximumf %158, %159 : vector<2x64xf32>
    %c0_100 = arith.constant 0 : index
    %c0_101 = arith.constant 0 : index
    %c0_102 = arith.constant 0 : index
    %161 = vector.load %arg17[%c0_100, %c0_101, %c0_102] : memref<1x64x3xf32, #tpu.memory_space<vmem>>, vector<1x64x3xf32>
    %162 = vector.shape_cast %161 : vector<1x64x3xf32> to vector<64x3xf32>
    %cst_103 = arith.constant dense<0.000000e+00> : vector<2x3xf32>
    %163 = tpu.matmul %160, %162, %cst_103 {dimension_numbers = #tpu.dot_dimension_numbers<[1], [0], [0], [1], [0, 0, 1, 1], [], []>} : vector<2x64xf32>, vector<64x3xf32>, vector<2x3xf32> -> vector<2x3xf32>
    %c0_104 = arith.constant 0 : index
    %c0_105 = arith.constant 0 : index
    %c0_106 = arith.constant 0 : index
    %164 = vector.load %arg18[%c0_104, %c0_105, %c0_106] : memref<1x1x3xf32, #tpu.memory_space<vmem>>, vector<1x1x3xf32>
    %165 = vector.shape_cast %164 : vector<1x1x3xf32> to vector<1x3xf32>
    %166 = vector.broadcast %165 : vector<1x3xf32> to vector<2x3xf32>
    %167 = arith.addf %163, %166 : vector<2x3xf32>
    %168 = arith.subf %167, %151 : vector<2x3xf32>
    %169 = arith.mulf %135, %135 : vector<2x4xf32>
    %cst_107 = arith.constant dense<0.000000e+00> : vector<2xf32>
    %170 = vector.multi_reduction <add>, %169, %cst_107 [1] : vector<2x4xf32> to vector<2xf32>
    %171 = vector.shape_cast %170 : vector<2xf32> to vector<2x1xf32>
    %172 = math.rsqrt %171 : vector<2x1xf32>
    %173 = vector.broadcast %172 : vector<2x1xf32> to vector<2x4xf32>
    %174 = arith.mulf %135, %173 : vector<2x4xf32>
    %175 = vector.extract_strided_slice %174 {offsets = [0, 0], sizes = [2, 1], strides = [1, 1]} : vector<2x4xf32> to vector<2x1xf32>
    %176 = vector.extract_strided_slice %174 {offsets = [0, 1], sizes = [2, 1], strides = [1, 1]} : vector<2x4xf32> to vector<2x1xf32>
    %177 = vector.extract_strided_slice %174 {offsets = [0, 2], sizes = [2, 1], strides = [1, 1]} : vector<2x4xf32> to vector<2x1xf32>
    %178 = vector.extract_strided_slice %174 {offsets = [0, 3], sizes = [2, 1], strides = [1, 1]} : vector<2x4xf32> to vector<2x1xf32>
    %179 = arith.mulf %177, %177 : vector<2x1xf32>
    %180 = arith.mulf %178, %178 : vector<2x1xf32>
    %181 = arith.addf %179, %180 : vector<2x1xf32>
    %cst_108 = arith.constant 2.000000e+00 : f32
    %182 = vector.broadcast %cst_108 : f32 to vector<2x1xf32>
    %183 = arith.mulf %182, %181 : vector<2x1xf32>
    %cst_109 = arith.constant 1.000000e+00 : f32
    %184 = vector.broadcast %cst_109 : f32 to vector<2x1xf32>
    %185 = arith.subf %184, %183 : vector<2x1xf32>
    %186 = arith.mulf %176, %177 : vector<2x1xf32>
    %187 = arith.mulf %175, %178 : vector<2x1xf32>
    %188 = arith.subf %186, %187 : vector<2x1xf32>
    %cst_110 = arith.constant 2.000000e+00 : f32
    %189 = vector.broadcast %cst_110 : f32 to vector<2x1xf32>
    %190 = arith.mulf %189, %188 : vector<2x1xf32>
    %191 = arith.mulf %176, %178 : vector<2x1xf32>
    %192 = arith.mulf %175, %177 : vector<2x1xf32>
    %193 = arith.addf %191, %192 : vector<2x1xf32>
    %cst_111 = arith.constant 2.000000e+00 : f32
    %194 = vector.broadcast %cst_111 : f32 to vector<2x1xf32>
    %195 = arith.mulf %194, %193 : vector<2x1xf32>
    %196 = arith.mulf %176, %177 : vector<2x1xf32>
    %197 = arith.mulf %175, %178 : vector<2x1xf32>
    %198 = arith.addf %196, %197 : vector<2x1xf32>
    %cst_112 = arith.constant 2.000000e+00 : f32
    %199 = vector.broadcast %cst_112 : f32 to vector<2x1xf32>
    %200 = arith.mulf %199, %198 : vector<2x1xf32>
    %201 = arith.mulf %176, %176 : vector<2x1xf32>
    %202 = arith.mulf %178, %178 : vector<2x1xf32>
    %203 = arith.addf %201, %202 : vector<2x1xf32>
    %cst_113 = arith.constant 2.000000e+00 : f32
    %204 = vector.broadcast %cst_113 : f32 to vector<2x1xf32>
    %205 = arith.mulf %204, %203 : vector<2x1xf32>
    %cst_114 = arith.constant 1.000000e+00 : f32
    %206 = vector.broadcast %cst_114 : f32 to vector<2x1xf32>
    %207 = arith.subf %206, %205 : vector<2x1xf32>
    %208 = arith.mulf %177, %178 : vector<2x1xf32>
    %209 = arith.mulf %175, %176 : vector<2x1xf32>
    %210 = arith.subf %208, %209 : vector<2x1xf32>
    %cst_115 = arith.constant 2.000000e+00 : f32
    %211 = vector.broadcast %cst_115 : f32 to vector<2x1xf32>
    %212 = arith.mulf %211, %210 : vector<2x1xf32>
    %213 = arith.mulf %176, %178 : vector<2x1xf32>
    %214 = arith.mulf %175, %177 : vector<2x1xf32>
    %215 = arith.subf %213, %214 : vector<2x1xf32>
    %cst_116 = arith.constant 2.000000e+00 : f32
    %216 = vector.broadcast %cst_116 : f32 to vector<2x1xf32>
    %217 = arith.mulf %216, %215 : vector<2x1xf32>
    %218 = arith.mulf %177, %178 : vector<2x1xf32>
    %219 = arith.mulf %175, %176 : vector<2x1xf32>
    %220 = arith.addf %218, %219 : vector<2x1xf32>
    %cst_117 = arith.constant 2.000000e+00 : f32
    %221 = vector.broadcast %cst_117 : f32 to vector<2x1xf32>
    %222 = arith.mulf %221, %220 : vector<2x1xf32>
    %223 = arith.mulf %176, %176 : vector<2x1xf32>
    %224 = arith.mulf %177, %177 : vector<2x1xf32>
    %225 = arith.addf %223, %224 : vector<2x1xf32>
    %cst_118 = arith.constant 2.000000e+00 : f32
    %226 = vector.broadcast %cst_118 : f32 to vector<2x1xf32>
    %227 = arith.mulf %226, %225 : vector<2x1xf32>
    %cst_119 = arith.constant 1.000000e+00 : f32
    %228 = vector.broadcast %cst_119 : f32 to vector<2x1xf32>
    %229 = arith.subf %228, %227 : vector<2x1xf32>
    %230 = tpu.iota {dimensions = array<i32: 1>} : vector<2x3xi32>
    %c0_i32_120 = arith.constant 0 : i32
    %231 = vector.broadcast %c0_i32_120 : i32 to vector<2x3xi32>
    %232 = arith.cmpi eq, %230, %231 : vector<2x3xi32>
    %cst_121 = arith.constant 0.000000e+00 : f32
    %233 = vector.shape_cast %185 : vector<2x1xf32> to vector<2x1xf32>
    %234 = vector.broadcast %233 : vector<2x1xf32> to vector<2x3xf32>
    %235 = vector.broadcast %cst_121 : f32 to vector<2x3xf32>
    %236 = arith.select %232, %234, %235 : vector<2x3xi1>, vector<2x3xf32>
    %c1_i32_122 = arith.constant 1 : i32
    %237 = vector.broadcast %c1_i32_122 : i32 to vector<2x3xi32>
    %238 = arith.cmpi eq, %230, %237 : vector<2x3xi32>
    %239 = vector.shape_cast %200 : vector<2x1xf32> to vector<2x1xf32>
    %240 = vector.broadcast %239 : vector<2x1xf32> to vector<2x3xf32>
    %241 = arith.select %238, %240, %236 : vector<2x3xi1>, vector<2x3xf32>
    %c2_i32 = arith.constant 2 : i32
    %242 = vector.broadcast %c2_i32 : i32 to vector<2x3xi32>
    %243 = arith.cmpi eq, %230, %242 : vector<2x3xi32>
    %244 = vector.shape_cast %217 : vector<2x1xf32> to vector<2x1xf32>
    %245 = vector.broadcast %244 : vector<2x1xf32> to vector<2x3xf32>
    %246 = arith.select %243, %245, %241 : vector<2x3xi1>, vector<2x3xf32>
    %247 = vector.shape_cast %246 : vector<2x3xf32> to vector<2x1x3xf32>
    %c0_i32_123 = arith.constant 0 : i32
    %248 = vector.broadcast %c0_i32_123 : i32 to vector<2x3xi32>
    %249 = arith.cmpi eq, %230, %248 : vector<2x3xi32>
    %cst_124 = arith.constant 0.000000e+00 : f32
    %250 = vector.shape_cast %190 : vector<2x1xf32> to vector<2x1xf32>
    %251 = vector.broadcast %250 : vector<2x1xf32> to vector<2x3xf32>
    %252 = vector.broadcast %cst_124 : f32 to vector<2x3xf32>
    %253 = arith.select %249, %251, %252 : vector<2x3xi1>, vector<2x3xf32>
    %c1_i32_125 = arith.constant 1 : i32
    %254 = vector.broadcast %c1_i32_125 : i32 to vector<2x3xi32>
    %255 = arith.cmpi eq, %230, %254 : vector<2x3xi32>
    %256 = vector.shape_cast %207 : vector<2x1xf32> to vector<2x1xf32>
    %257 = vector.broadcast %256 : vector<2x1xf32> to vector<2x3xf32>
    %258 = arith.select %255, %257, %253 : vector<2x3xi1>, vector<2x3xf32>
    %c2_i32_126 = arith.constant 2 : i32
    %259 = vector.broadcast %c2_i32_126 : i32 to vector<2x3xi32>
    %260 = arith.cmpi eq, %230, %259 : vector<2x3xi32>
    %261 = vector.shape_cast %222 : vector<2x1xf32> to vector<2x1xf32>
    %262 = vector.broadcast %261 : vector<2x1xf32> to vector<2x3xf32>
    %263 = arith.select %260, %262, %258 : vector<2x3xi1>, vector<2x3xf32>
    %264 = vector.shape_cast %263 : vector<2x3xf32> to vector<2x1x3xf32>
    %c0_i32_127 = arith.constant 0 : i32
    %265 = vector.broadcast %c0_i32_127 : i32 to vector<2x3xi32>
    %266 = arith.cmpi eq, %230, %265 : vector<2x3xi32>
    %cst_128 = arith.constant 0.000000e+00 : f32
    %267 = vector.shape_cast %195 : vector<2x1xf32> to vector<2x1xf32>
    %268 = vector.broadcast %267 : vector<2x1xf32> to vector<2x3xf32>
    %269 = vector.broadcast %cst_128 : f32 to vector<2x3xf32>
    %270 = arith.select %266, %268, %269 : vector<2x3xi1>, vector<2x3xf32>
    %c1_i32_129 = arith.constant 1 : i32
    %271 = vector.broadcast %c1_i32_129 : i32 to vector<2x3xi32>
    %272 = arith.cmpi eq, %230, %271 : vector<2x3xi32>
    %273 = vector.shape_cast %212 : vector<2x1xf32> to vector<2x1xf32>
    %274 = vector.broadcast %273 : vector<2x1xf32> to vector<2x3xf32>
    %275 = arith.select %272, %274, %270 : vector<2x3xi1>, vector<2x3xf32>
    %c2_i32_130 = arith.constant 2 : i32
    %276 = vector.broadcast %c2_i32_130 : i32 to vector<2x3xi32>
    %277 = arith.cmpi eq, %230, %276 : vector<2x3xi32>
    %278 = vector.shape_cast %229 : vector<2x1xf32> to vector<2x1xf32>
    %279 = vector.broadcast %278 : vector<2x1xf32> to vector<2x3xf32>
    %280 = arith.select %277, %279, %275 : vector<2x3xi1>, vector<2x3xf32>
    %281 = vector.shape_cast %280 : vector<2x3xf32> to vector<2x1x3xf32>
    %282 = vector.shape_cast %168 : vector<2x3xf32> to vector<2x1x3xf32>
    %283 = vector.extract_strided_slice %3 {offsets = [0, 0, 0], sizes = [2, 16, 1], strides = [1, 1, 1]} : vector<2x16x3xf32> to vector<2x16x1xf32>
    %284 = vector.broadcast %283 : vector<2x16x1xf32> to vector<2x16x3xf32>
    %285 = vector.broadcast %247 : vector<2x1x3xf32> to vector<2x16x3xf32>
    %286 = arith.mulf %284, %285 : vector<2x16x3xf32>
    %287 = vector.extract_strided_slice %3 {offsets = [0, 0, 1], sizes = [2, 16, 1], strides = [1, 1, 1]} : vector<2x16x3xf32> to vector<2x16x1xf32>
    %288 = vector.broadcast %287 : vector<2x16x1xf32> to vector<2x16x3xf32>
    %289 = vector.broadcast %264 : vector<2x1x3xf32> to vector<2x16x3xf32>
    %290 = arith.mulf %288, %289 : vector<2x16x3xf32>
    %291 = arith.addf %286, %290 : vector<2x16x3xf32>
    %292 = vector.extract_strided_slice %3 {offsets = [0, 0, 2], sizes = [2, 16, 1], strides = [1, 1, 1]} : vector<2x16x3xf32> to vector<2x16x1xf32>
    %293 = vector.broadcast %292 : vector<2x16x1xf32> to vector<2x16x3xf32>
    %294 = vector.broadcast %281 : vector<2x1x3xf32> to vector<2x16x3xf32>
    %295 = arith.mulf %293, %294 : vector<2x16x3xf32>
    %296 = arith.addf %291, %295 : vector<2x16x3xf32>
    %297 = vector.broadcast %282 : vector<2x1x3xf32> to vector<2x16x3xf32>
    %298 = arith.addf %296, %297 : vector<2x16x3xf32>
    %c0_131 = arith.constant 0 : index
    %c0_132 = arith.constant 0 : index
    %299 = vector.load %arg22[%c0_131, %c0_132] : memref<2x7xf32, #tpu.memory_space<vmem>>, vector<2x7xf32>
    %300 = vector.extract_strided_slice %299 {offsets = [0, 0], sizes = [2, 4], strides = [1, 1]} : vector<2x7xf32> to vector<2x4xf32>
    %301 = arith.mulf %300, %300 : vector<2x4xf32>
    %cst_133 = arith.constant dense<0.000000e+00> : vector<2xf32>
    %302 = vector.multi_reduction <add>, %301, %cst_133 [1] : vector<2x4xf32> to vector<2xf32>
    %303 = vector.shape_cast %302 : vector<2xf32> to vector<2x1xf32>
    %304 = math.rsqrt %303 : vector<2x1xf32>
    %305 = vector.broadcast %304 : vector<2x1xf32> to vector<2x4xf32>
    %306 = arith.mulf %300, %305 : vector<2x4xf32>
    %307 = vector.extract_strided_slice %306 {offsets = [0, 0], sizes = [2, 1], strides = [1, 1]} : vector<2x4xf32> to vector<2x1xf32>
    %308 = vector.extract_strided_slice %306 {offsets = [0, 1], sizes = [2, 1], strides = [1, 1]} : vector<2x4xf32> to vector<2x1xf32>
    %309 = vector.extract_strided_slice %306 {offsets = [0, 2], sizes = [2, 1], strides = [1, 1]} : vector<2x4xf32> to vector<2x1xf32>
    %310 = vector.extract_strided_slice %306 {offsets = [0, 3], sizes = [2, 1], strides = [1, 1]} : vector<2x4xf32> to vector<2x1xf32>
    %311 = arith.mulf %175, %307 : vector<2x1xf32>
    %312 = arith.mulf %176, %308 : vector<2x1xf32>
    %313 = arith.subf %311, %312 : vector<2x1xf32>
    %314 = arith.mulf %177, %309 : vector<2x1xf32>
    %315 = arith.subf %313, %314 : vector<2x1xf32>
    %316 = arith.mulf %178, %310 : vector<2x1xf32>
    %317 = arith.subf %315, %316 : vector<2x1xf32>
    %318 = arith.mulf %175, %308 : vector<2x1xf32>
    %319 = arith.mulf %176, %307 : vector<2x1xf32>
    %320 = arith.addf %318, %319 : vector<2x1xf32>
    %321 = arith.mulf %177, %310 : vector<2x1xf32>
    %322 = arith.addf %320, %321 : vector<2x1xf32>
    %323 = arith.mulf %178, %309 : vector<2x1xf32>
    %324 = arith.subf %322, %323 : vector<2x1xf32>
    %325 = arith.mulf %175, %309 : vector<2x1xf32>
    %326 = arith.mulf %176, %310 : vector<2x1xf32>
    %327 = arith.subf %325, %326 : vector<2x1xf32>
    %328 = arith.mulf %177, %307 : vector<2x1xf32>
    %329 = arith.addf %327, %328 : vector<2x1xf32>
    %330 = arith.mulf %178, %308 : vector<2x1xf32>
    %331 = arith.addf %329, %330 : vector<2x1xf32>
    %332 = arith.mulf %175, %310 : vector<2x1xf32>
    %333 = arith.mulf %176, %309 : vector<2x1xf32>
    %334 = arith.addf %332, %333 : vector<2x1xf32>
    %335 = arith.mulf %177, %308 : vector<2x1xf32>
    %336 = arith.subf %334, %335 : vector<2x1xf32>
    %337 = arith.mulf %178, %307 : vector<2x1xf32>
    %338 = arith.addf %336, %337 : vector<2x1xf32>
    %339 = vector.extract_strided_slice %299 {offsets = [0, 4], sizes = [2, 1], strides = [1, 1]} : vector<2x7xf32> to vector<2x1xf32>
    %340 = vector.extract_strided_slice %299 {offsets = [0, 5], sizes = [2, 1], strides = [1, 1]} : vector<2x7xf32> to vector<2x1xf32>
    %341 = vector.extract_strided_slice %299 {offsets = [0, 6], sizes = [2, 1], strides = [1, 1]} : vector<2x7xf32> to vector<2x1xf32>
    %342 = arith.mulf %185, %339 : vector<2x1xf32>
    %343 = arith.mulf %190, %340 : vector<2x1xf32>
    %344 = arith.addf %342, %343 : vector<2x1xf32>
    %345 = arith.mulf %195, %341 : vector<2x1xf32>
    %346 = arith.addf %344, %345 : vector<2x1xf32>
    %347 = vector.extract_strided_slice %168 {offsets = [0, 0], sizes = [2, 1], strides = [1, 1]} : vector<2x3xf32> to vector<2x1xf32>
    %348 = arith.addf %346, %347 : vector<2x1xf32>
    %349 = arith.mulf %200, %339 : vector<2x1xf32>
    %350 = arith.mulf %207, %340 : vector<2x1xf32>
    %351 = arith.addf %349, %350 : vector<2x1xf32>
    %352 = arith.mulf %212, %341 : vector<2x1xf32>
    %353 = arith.addf %351, %352 : vector<2x1xf32>
    %354 = vector.extract_strided_slice %168 {offsets = [0, 1], sizes = [2, 1], strides = [1, 1]} : vector<2x3xf32> to vector<2x1xf32>
    %355 = arith.addf %353, %354 : vector<2x1xf32>
    %356 = arith.mulf %217, %339 : vector<2x1xf32>
    %357 = arith.mulf %222, %340 : vector<2x1xf32>
    %358 = arith.addf %356, %357 : vector<2x1xf32>
    %359 = arith.mulf %229, %341 : vector<2x1xf32>
    %360 = arith.addf %358, %359 : vector<2x1xf32>
    %361 = vector.extract_strided_slice %168 {offsets = [0, 2], sizes = [2, 1], strides = [1, 1]} : vector<2x3xf32> to vector<2x1xf32>
    %362 = arith.addf %360, %361 : vector<2x1xf32>
    %363 = tpu.iota {dimensions = array<i32: 1>} : vector<2x7xi32>
    %cst_134 = arith.constant 0.000000e+00 : f32
    %364 = vector.broadcast %cst_134 : f32 to vector<2x7xf32>
    %c0_i32_135 = arith.constant 0 : i32
    %365 = vector.broadcast %c0_i32_135 : i32 to vector<2x7xi32>
    %366 = arith.cmpi eq, %363, %365 : vector<2x7xi32>
    %367 = vector.shape_cast %317 : vector<2x1xf32> to vector<2x1xf32>
    %368 = vector.broadcast %367 : vector<2x1xf32> to vector<2x7xf32>
    %369 = arith.select %366, %368, %364 : vector<2x7xi1>, vector<2x7xf32>
    %c1_i32_136 = arith.constant 1 : i32
    %370 = vector.broadcast %c1_i32_136 : i32 to vector<2x7xi32>
    %371 = arith.cmpi eq, %363, %370 : vector<2x7xi32>
    %372 = vector.shape_cast %324 : vector<2x1xf32> to vector<2x1xf32>
    %373 = vector.broadcast %372 : vector<2x1xf32> to vector<2x7xf32>
    %374 = arith.select %371, %373, %369 : vector<2x7xi1>, vector<2x7xf32>
    %c2_i32_137 = arith.constant 2 : i32
    %375 = vector.broadcast %c2_i32_137 : i32 to vector<2x7xi32>
    %376 = arith.cmpi eq, %363, %375 : vector<2x7xi32>
    %377 = vector.shape_cast %331 : vector<2x1xf32> to vector<2x1xf32>
    %378 = vector.broadcast %377 : vector<2x1xf32> to vector<2x7xf32>
    %379 = arith.select %376, %378, %374 : vector<2x7xi1>, vector<2x7xf32>
    %c3_i32 = arith.constant 3 : i32
    %380 = vector.broadcast %c3_i32 : i32 to vector<2x7xi32>
    %381 = arith.cmpi eq, %363, %380 : vector<2x7xi32>
    %382 = vector.shape_cast %338 : vector<2x1xf32> to vector<2x1xf32>
    %383 = vector.broadcast %382 : vector<2x1xf32> to vector<2x7xf32>
    %384 = arith.select %381, %383, %379 : vector<2x7xi1>, vector<2x7xf32>
    %c4_i32 = arith.constant 4 : i32
    %385 = vector.broadcast %c4_i32 : i32 to vector<2x7xi32>
    %386 = arith.cmpi eq, %363, %385 : vector<2x7xi32>
    %387 = vector.shape_cast %348 : vector<2x1xf32> to vector<2x1xf32>
    %388 = vector.broadcast %387 : vector<2x1xf32> to vector<2x7xf32>
    %389 = arith.select %386, %388, %384 : vector<2x7xi1>, vector<2x7xf32>
    %c5_i32 = arith.constant 5 : i32
    %390 = vector.broadcast %c5_i32 : i32 to vector<2x7xi32>
    %391 = arith.cmpi eq, %363, %390 : vector<2x7xi32>
    %392 = vector.shape_cast %355 : vector<2x1xf32> to vector<2x1xf32>
    %393 = vector.broadcast %392 : vector<2x1xf32> to vector<2x7xf32>
    %394 = arith.select %391, %393, %389 : vector<2x7xi1>, vector<2x7xf32>
    %c6_i32 = arith.constant 6 : i32
    %395 = vector.broadcast %c6_i32 : i32 to vector<2x7xi32>
    %396 = arith.cmpi eq, %363, %395 : vector<2x7xi32>
    %397 = vector.shape_cast %362 : vector<2x1xf32> to vector<2x1xf32>
    %398 = vector.broadcast %397 : vector<2x1xf32> to vector<2x7xf32>
    %399 = arith.select %396, %398, %394 : vector<2x7xi1>, vector<2x7xf32>
    %c0_138 = arith.constant 0 : index
    %c0_139 = arith.constant 0 : index
    %c0_140 = arith.constant 0 : index
    %400 = vector.load %arg21[%c0_138, %c0_139, %c0_140] : memref<2x16x3xf32, #tpu.memory_space<vmem>>, vector<2x16x3xf32>
    tpu.vector_store %arg21[%c0_138, %c0_139, %c0_140], %298 {strides = array<i32>} : memref<2x16x3xf32, #tpu.memory_space<vmem>>, vector<2x16x3xf32>,
    %c0_141 = arith.constant 0 : index
    %c0_142 = arith.constant 0 : index
    %401 = vector.load %arg22[%c0_141, %c0_142] : memref<2x7xf32, #tpu.memory_space<vmem>>, vector<2x7xf32>
    tpu.vector_store %arg22[%c0_141, %c0_142], %399 {strides = array<i32>} : memref<2x7xf32, #tpu.memory_space<vmem>>, vector<2x7xf32>,
    %402 = vector.shape_cast %298 : vector<2x16x3xf32> to vector<1x2x16x3xf32>
    %c0_143 = arith.constant 0 : index
    %c0_144 = arith.constant 0 : index
    %c0_145 = arith.constant 0 : index
    %c0_146 = arith.constant 0 : index
    %403 = vector.load %arg19[%c0_143, %c0_144, %c0_145, %c0_146] : memref<1x2x16x3xf32, #tpu.memory_space<vmem>>, vector<1x2x16x3xf32>
    tpu.vector_store %arg19[%c0_143, %c0_144, %c0_145, %c0_146], %402 {strides = array<i32>} : memref<1x2x16x3xf32, #tpu.memory_space<vmem>>, vector<1x2x16x3xf32>,
    %404 = vector.shape_cast %399 : vector<2x7xf32> to vector<1x2x7xf32>
    %c0_147 = arith.constant 0 : index
    %c0_148 = arith.constant 0 : index
    %c0_149 = arith.constant 0 : index
    %405 = vector.load %arg20[%c0_147, %c0_148, %c0_149] : memref<1x2x7xf32, #tpu.memory_space<vmem>>, vector<1x2x7xf32>
    tpu.vector_store %arg20[%c0_147, %c0_148, %c0_149], %404 {strides = array<i32>} : memref<1x2x7xf32, #tpu.memory_space<vmem>>, vector<1x2x7xf32>,
    return
  }
  func.func @transform_0(%arg0: i32) -> (i32, i32, i32) {
    %c0_i32 = arith.constant 0 : i32
    %c0_i32_0 = arith.constant 0 : i32
    %c0_i32_1 = arith.constant 0 : i32
    %c0_i32_2 = arith.constant 0 : i32
    return %c0_i32, %c0_i32_0, %c0_i32_1 : i32, i32, i32
  }
  func.func @transform_1(%arg0: i32) -> (i32, i32, i32) {
    %c0_i32 = arith.constant 0 : i32
    %c0_i32_0 = arith.constant 0 : i32
    %c0_i32_1 = arith.constant 0 : i32
    %c0_i32_2 = arith.constant 0 : i32
    return %c0_i32, %c0_i32_0, %c0_i32_1 : i32, i32, i32
  }
  func.func @transform_2(%arg0: i32) -> (i32, i32, i32) {
    %c0_i32 = arith.constant 0 : i32
    %c0_i32_0 = arith.constant 0 : i32
    %c0_i32_1 = arith.constant 0 : i32
    return %arg0, %c0_i32, %c0_i32_0 : i32, i32, i32
  }
  func.func @transform_3(%arg0: i32) -> (i32, i32, i32) {
    %c0_i32 = arith.constant 0 : i32
    %c0_i32_0 = arith.constant 0 : i32
    %c0_i32_1 = arith.constant 0 : i32
    return %arg0, %c0_i32, %c0_i32_0 : i32, i32, i32
  }
  func.func @transform_4(%arg0: i32) -> (i32, i32, i32) {
    %c0_i32 = arith.constant 0 : i32
    %c0_i32_0 = arith.constant 0 : i32
    %c0_i32_1 = arith.constant 0 : i32
    return %arg0, %c0_i32, %c0_i32_0 : i32, i32, i32
  }
  func.func @transform_5(%arg0: i32) -> (i32, i32, i32) {
    %c0_i32 = arith.constant 0 : i32
    %c0_i32_0 = arith.constant 0 : i32
    %c0_i32_1 = arith.constant 0 : i32
    return %arg0, %c0_i32, %c0_i32_0 : i32, i32, i32
  }
  func.func @transform_6(%arg0: i32) -> (i32, i32, i32) {
    %c0_i32 = arith.constant 0 : i32
    %c0_i32_0 = arith.constant 0 : i32
    %c0_i32_1 = arith.constant 0 : i32
    return %arg0, %c0_i32, %c0_i32_0 : i32, i32, i32
  }
  func.func @transform_7(%arg0: i32) -> (i32, i32, i32) {
    %c0_i32 = arith.constant 0 : i32
    %c0_i32_0 = arith.constant 0 : i32
    %c0_i32_1 = arith.constant 0 : i32
    return %arg0, %c0_i32, %c0_i32_0 : i32, i32, i32
  }
  func.func @transform_8(%arg0: i32) -> (i32, i32, i32) {
    %c0_i32 = arith.constant 0 : i32
    %c0_i32_0 = arith.constant 0 : i32
    %c0_i32_1 = arith.constant 0 : i32
    return %arg0, %c0_i32, %c0_i32_0 : i32, i32, i32
  }
  func.func @transform_9(%arg0: i32) -> (i32, i32, i32) {
    %c0_i32 = arith.constant 0 : i32
    %c0_i32_0 = arith.constant 0 : i32
    %c0_i32_1 = arith.constant 0 : i32
    return %arg0, %c0_i32, %c0_i32_0 : i32, i32, i32
  }
  func.func @transform_10(%arg0: i32) -> (i32, i32, i32) {
    %c0_i32 = arith.constant 0 : i32
    %c0_i32_0 = arith.constant 0 : i32
    %c0_i32_1 = arith.constant 0 : i32
    return %arg0, %c0_i32, %c0_i32_0 : i32, i32, i32
  }
  func.func @transform_11(%arg0: i32) -> (i32, i32, i32) {
    %c0_i32 = arith.constant 0 : i32
    %c0_i32_0 = arith.constant 0 : i32
    %c0_i32_1 = arith.constant 0 : i32
    return %arg0, %c0_i32, %c0_i32_0 : i32, i32, i32
  }
  func.func @transform_12(%arg0: i32) -> (i32, i32, i32) {
    %c0_i32 = arith.constant 0 : i32
    %c0_i32_0 = arith.constant 0 : i32
    %c0_i32_1 = arith.constant 0 : i32
    return %arg0, %c0_i32, %c0_i32_0 : i32, i32, i32
  }
  func.func @transform_13(%arg0: i32) -> (i32, i32, i32) {
    %c0_i32 = arith.constant 0 : i32
    %c0_i32_0 = arith.constant 0 : i32
    %c0_i32_1 = arith.constant 0 : i32
    return %arg0, %c0_i32, %c0_i32_0 : i32, i32, i32
  }
  func.func @transform_14(%arg0: i32) -> (i32, i32, i32) {
    %c0_i32 = arith.constant 0 : i32
    %c0_i32_0 = arith.constant 0 : i32
    %c0_i32_1 = arith.constant 0 : i32
    return %arg0, %c0_i32, %c0_i32_0 : i32, i32, i32
  }
  func.func @transform_15(%arg0: i32) -> (i32, i32, i32) {
    %c0_i32 = arith.constant 0 : i32
    %c0_i32_0 = arith.constant 0 : i32
    %c0_i32_1 = arith.constant 0 : i32
    return %arg0, %c0_i32, %c0_i32_0 : i32, i32, i32
  }
  func.func @transform_16(%arg0: i32) -> (i32, i32, i32) {
    %c0_i32 = arith.constant 0 : i32
    %c0_i32_0 = arith.constant 0 : i32
    %c0_i32_1 = arith.constant 0 : i32
    return %arg0, %c0_i32, %c0_i32_0 : i32, i32, i32
  }
  func.func @transform_17(%arg0: i32) -> (i32, i32, i32) {
    %c0_i32 = arith.constant 0 : i32
    %c0_i32_0 = arith.constant 0 : i32
    %c0_i32_1 = arith.constant 0 : i32
    return %arg0, %c0_i32, %c0_i32_0 : i32, i32, i32
  }
  func.func @transform_18(%arg0: i32) -> (i32, i32, i32, i32) {
    %c0_i32 = arith.constant 0 : i32
    %c0_i32_0 = arith.constant 0 : i32
    %c0_i32_1 = arith.constant 0 : i32
    %c0_i32_2 = arith.constant 0 : i32
    return %arg0, %c0_i32, %c0_i32_0, %c0_i32_1 : i32, i32, i32, i32
  }
  func.func @transform_19(%arg0: i32) -> (i32, i32, i32) {
    %c0_i32 = arith.constant 0 : i32
    %c0_i32_0 = arith.constant 0 : i32
    %c0_i32_1 = arith.constant 0 : i32
    return %arg0, %c0_i32, %c0_i32_0 : i32, i32, i32
  }
}

</mosaic_0001>

<bundles_post_ra>
// kernel: net_forward.1
= control target key start
LH: loop header
LB: loop body
LE: loop exit
PB: predicated region body
PF: predicated region fallthrough
CT: control target
= control target key end

     0   :  { %s3142_s0 = inlined_call_operand.vmem [shape: f32[2,16,3], index: 0, kind: input, shape index: {}]   ;;  %s3143_s1 = inlined_call_operand.vmem [shape: f32[2,16,3], index: 1, kind: input, shape index: {}]   ;;  %s3144_s2 = inlined_call_operand.vmem [shape: f32[4,3,32], index: 2, kind: input, shape index: {}]   ;;  %s3145_s3 = inlined_call_operand.vmem [shape: f32[4,1,32], index: 3, kind: input, shape index: {}]   ;;  %s3146_s4 = inlined_call_operand.vmem [shape: f32[4,32,64], index: 4, kind: input, shape index: {}]   ;;  %s3147_s5 = inlined_call_operand.vmem [shape: f32[4,1,64], index: 5, kind: input, shape index: {}]   ;;  %s3148_s6 = inlined_call_operand.vmem [shape: f32[4,64,128], index: 6, kind: input, shape index: {}]   ;;  %s3149_s7 = inlined_call_operand.vmem [shape: f32[4,1,128], index: 7, kind: input, shape index: {}]   ;;  %s3150_s8 = inlined_call_operand.vmem [shape: f32[4,256,128], index: 8, kind: input, shape index: {}]   ;;  %s3151_s9 = inlined_call_operand.vmem [shape: f32[4,1,128], index: 9, kind: input, shape index: {}]   ;;  %s3152_s10 = inlined_call_operand.vmem [shape: f32[4,256,64], index: 10, kind: input, shape index: {}]   ;;  %s3153_s11 = inlined_call_operand.vmem [shape: f32[4,1,64], index: 11, kind: input, shape index: {}]   ;;  %s3154_s12 = inlined_call_operand.vmem [shape: f32[4,64,4], index: 12, kind: input, shape index: {}]   ;;  %s3155_s13 = inlined_call_operand.vmem [shape: f32[4,1,4], index: 13, kind: input, shape index: {}]   ;;  %s3156_s14 = inlined_call_operand.vmem [shape: f32[4,192,64], index: 14, kind: input, shape index: {}]   ;;  %s3157_s15 = inlined_call_operand.vmem [shape: f32[4,1,64], index: 15, kind: input, shape index: {}]   ;;  %s3158_s16 = inlined_call_operand.vmem [shape: f32[4,64,3], index: 16, kind: input, shape index: {}]   ;;  %s3159_s17 = inlined_call_operand.vmem [shape: f32[4,1,3], index: 17, kind: input, shape index: {}]   ;;  %s3160_s18 = inlined_call_operand.vmem [shape: f32[4,2,16,3], index: 18, kind: output, shape index: {0}]   ;;  %s3161_s19 = inlined_call_operand.vmem [shape: f32[4,2,7], index: 19, kind: output, shape index: {1}]  }
   0x1   :  { %3167 = sst [smem:[#allocation7_spill]] %s3142_s0  ;;  %s2491_s0 = smov 0  }
   0x2   :  { %3168 = sst [smem:[#allocation8_spill]] %s3143_s1 }
   0x3   :  { %3169 = sst [smem:[#allocation9_spill]] %s3144_s2 }
   0x4   :  { %3170 = sst [smem:[#allocation10_spill]] %s3145_s3 }
   0x5   :  { %3171 = sst [smem:[#allocation11_spill]] %s3146_s4 }
   0x6   :  { %3172 = sst [smem:[#allocation12_spill]] %s3147_s5 }
   0x7   :  { %3173 = sst [smem:[#allocation13_spill]] %s3148_s6 }
   0x8   :  { %3174 = sst [smem:[#allocation14_spill]] %s3149_s7 }
   0x9   :  { %3175 = sst [smem:[#allocation15_spill]] %s3150_s8 }
   0xa   :  { %3176 = sst [smem:[#allocation16_spill]] %s3152_s10 }
   0xb   :  { %3177 = sst [smem:[#allocation17_spill]] %s3154_s12 }
   0xc   :  { %3178 = sst [smem:[#allocation18_spill]] %s3155_s13 }
   0xd   :  { %3179 = sst [smem:[#allocation19_spill]] %s3160_s18 }
   0xe   :  { %3180 = sst [smem:[#allocation20_spill]] %s3161_s19 }
   0xf LB: > { %3181 = sst [smem:[#allocation4_spill]] %s2376_s0  ;;  %s2497_s30 = sadd.s32 4294967295, %s2376_s0   ;;  %s2376_s0 = sphi %s2491_s0, %s30_s0  }
  0x10   : > { %3182 = sst [smem:[#allocation5_spill]] %s2497_s30  ;;  %p2257_p0 = scmp.ge.s32.totalorder %s2376_s0, 1 }
  0x11   : > { %p673_p1 = scmp.lt.s32.totalorder %s2376_s0, 5 }
  0x13   : > { %p674_p2 = pnand %p2257_p0, %p673_p1 }
  0x15   : > { %677 = sbr.rel (%p674_p2) target bundleno = 1874 (0x752), region = 92 }
  0x1a   : > { %p791_p3 = scmp.lt.s32.totalorder %s2497_s30, 3  ;;  %s3184_s3 = sld [smem:[#allocation9_spill]] }
  0x1b   : > { %s3185_s4 = sld [smem:[#allocation11_spill]] }
  0x1c   : > { %s2503_s20 = scalar_select %p791_p3, %s2497_s30, 3 }
  0x1d   : > { %s3189_s6 = sld [smem:[#allocation13_spill]] }
  0x1e   : > { %s2258_s21 = sshll.u32 %s2503_s20, 2  ;;  %s2303_s27 = sshll.u32 %s2503_s20, 5 }
  0x1f   : > { %s2304_s1 = sshll.u32 %s2503_s20, 6  ;;  %s2305_s23 = sshll.u32 %s2503_s20, 8 }
  0x20   : > { %s2513_s26 = scalar_lea.vmem %s3184_s3, %s2258_s21  ;;  %s3190_s8 = sld [smem:[#allocation15_spill]] }
  0x21   : > { %s2519_s0 = scalar_lea.vmem %s3185_s4, %s2303_s27  ;;  %s3191_s10 = sld [smem:[#allocation16_spill]] }
  0x22   : > { %3186 = sst [smem:[#allocation6_spill]] %s2519_s0  ;;  %s2310_s0 = smul.u32 192, %s2503_s20 }
  0x23   : > { %s2533_s3 = scalar_lea.vmem %s3189_s6, %s2304_s1  ;;  %s3192_s12 = sld [smem:[#allocation17_spill]] }
  0x24   : > { %s2274_s30 = sshll.u32 %s2503_s20, 1  ;;  %s3195_s18 = sld [smem:[#allocation20_spill]] }
  0x26   : > { %s2539_s4 = scalar_lea.vmem %s3190_s8, %s2305_s23  ;;  %s3194_s8 = sld [smem:[#allocation19_spill]] }
  0x27   : > { %s2548_s22 = scalar_lea.vmem %s3191_s10, %s2305_s23  ;;  %s2571_s10 = scalar_lea.vmem %s3158_s16, %s2304_s1 }
  0x28   : > { %s3196_s23 = sld [smem:[#allocation5_spill]] }
  0x29   : > { %s2557_s7 = scalar_lea.vmem %s3192_s12, %s2304_s1  ;;  %s2580_s12 = scalar_lea.vmem %s3156_s14, %s2310_s0 }
  0x2a   : > { %s2591_s1 = scalar_lea.vmem %s3195_s18, %s2274_s30 }
  0x2c   : > { %s2585_s13 = scalar_lea.vmem %s3194_s8, %s2303_s27 }
  0x2e   : > { %p2275_p4 = scmp.ne.s32.totalorder %s3196_s23, 0 }
  0x2f   : > { %s3197_s6 = sld [smem:[#allocation7_spill]] (!%p2275_p4) }
  0x30   : > { %866 = sbr.rel (%p2275_p4) target bundleno = 60 (0x3c), region = 96 }
  0x35   : > { %v867_v0 = vld [vmem:[%s3197_s6] sm:$0xff]  ;;  %vm871_vm0 = vcmask 23552   ;;  %v868_v1 = vld [vmem:[%s3197_s6 + $0x8] sm:$0xff]  ;;  %v869_v2 = vld [vmem:[%s3197_s6 + $0x10] sm:$0xff]  ;;  %v876_v3 = vlaneseq  ;;  %vm881_vm1 = vcmask 50176   ;;  %v2378_v6 = vmov 0.0  }
  0x36   : > { %872 = vst.msk [vmem:[#allocation2] sm:$0xff] %vm871_vm0, %v867_v0  ;;  %v870_v4 = vld [vmem:[%s3197_s6 + $0x18] sm:$0xff] }
  0x37   : > { %873 = vst.msk [vmem:[#allocation2 + $0x8] sm:$0xff] %vm871_vm0, %v868_v1  ;;  %v877_v5 = vand.u32 127, %v876_v3 }
  0x38   : > { %874 = vst.msk [vmem:[#allocation2 + $0x10] sm:$0xff] %vm871_vm0, %v869_v2 }
  0x39   : > { %875 = vst.msk [vmem:[#allocation2 + $0x18] sm:$0xff] %vm871_vm0, %v870_v4  ;;  %vm878_vm2 = vcmp.eq.s32.totalorder %v877_v5, 0 }
  0x3a   : > { %v2276_v7 = vsel %vm878_vm2, 1.0, %v2378_v6 }
  0x3b   : > { %882 = vst.msk [vmem:[#allocation3] sm:$0x3] %vm881_vm1, %v2276_v7 }
  0x3c PF: > { %s3198_s28 = sld [smem:[#allocation6_spill]]  ;;  %v891_v8 = vld [vmem:[%s2513_s26] sm:$0x7]  ;;  %vm921_vm3 = vcmask 1042432   ;;  %vm896_vm4 = vcmask 23552   ;;  %vm982_vm5 = vcmask 261120   ;;  %s3206_s25 = scalar_lea.vmem %s3151_s9, %s2503_s20 }
  0x3d   : > { %v2607_v9 = vld [vmem:[#allocation2] sm:$0xff]  ;;  %2277 = vmatpush.msk.msra.mxu0 %vm921_vm3, %v891_v8  ;;  %s3199_s30 = sld [smem:[#allocation8_spill]]  ;;  %v1108_v46 = vld [vmem:[%s2533_s3 + $0x38] sm:$0xff]  ;;  %v1107_v47 = vld [vmem:[%s2533_s3 + $0x30] sm:$0xff]  ;;  %vm1059_vm6 = vcmask 523264   ;;  %s2379_s24 = smov 64  }
  0x3e   : > { %2278 = vmatmul.msk.f32.vlgmr.msra.gmra.mxu0 %vm896_vm4, %v2607_v9  ;;  %v2611_v10 = vld [vmem:[#allocation2 + $0x8] sm:$0xff]  ;;  %s3200_s27 = sld [smem:[#allocation10_spill]]  ;;  %1124 = vmatpush.msra.mxu2 %v1108_v46  ;;  %v1105_v51 = vld [vmem:[%s2533_s3 + $0x20] sm:$0xff]  ;;  %v1104_v52 = vld [vmem:[%s2533_s3 + $0x18] sm:$0xff]  ;;  %s3208_s8 = scalar_lea.vmem %s3157_s15, %s2503_s20  ;;  %vm1585_vm9 = vcmask 25600  }
  0x3f   : > { %v2615_v11 = vld [vmem:[#allocation2 + $0x10] sm:$0xff]  ;;  %1148 = vmatpush.msra.mxu3 %v1108_v46  ;;  %v1106_v49 = vld [vmem:[%s2533_s3 + $0x28] sm:$0xff]  ;;  %s3202_s26 = sld [smem:[#allocation12_spill]]  ;;  %v1101_v60 = vld [vmem:[%s2533_s3] sm:$0xff]  ;;  %s2386_s19 = smov 124  }
  0x40   : > { %v2619_v12 = vld [vmem:[#allocation2 + $0x18] sm:$0xff]  ;;  %1125 = vmatpush.msra.mxu2 %v1107_v47  ;;  %v1103_v54 = vld [vmem:[%s2533_s3 + $0x10] sm:$0xff]  ;;  %v1102_v57 = vld [vmem:[%s2533_s3 + $0x8] sm:$0xff]  ;;  %s3204_s18 = sld [smem:[#allocation14_spill]]  ;;  %s2385_s3 = smov 1  }
  0x41   : > { %1149 = vmatpush.msra.mxu3 %v1107_v47  ;;  %s3209_s21 = sld [smem:[#allocation18_spill]] }
  0x42   : > { %v977_v13 = vld [vmem:[%s3198_s28 + $0x18] sm:$0xff]  ;;  %v976_v18 = vld [vmem:[%s3198_s28 + $0x10] sm:$0xff]  ;;  %v975_v19 = vld [vmem:[%s3198_s28 + $0x8] sm:$0xff]  ;;  %1126 = vmatpush.msra.mxu2 %v1106_v49 }
  0x43   : > { %1019 = vmatpush.msra.mxu1 %v977_v13  ;;  %v887_v14 = vld [vmem:[%s3199_s30] sm:$0xff]  ;;  %v888_v15 = vld [vmem:[%s3199_s30 + $0x8] sm:$0xff]  ;;  %v889_v16 = vld [vmem:[%s3199_s30 + $0x10] sm:$0xff]  ;;  %1150 = vmatpush.msra.mxu3 %v1106_v49 }
  0x44   : > { %v890_v17 = vld [vmem:[%s3199_s30 + $0x18] sm:$0xff]  ;;  %v974_v20 = vld [vmem:[%s3198_s28] sm:$0xff]  ;;  %s3201_s5 = scalar_lea.vmem %s3200_s27, %s2503_s20  ;;  %1127 = vmatpush.msra.mxu2 %v1105_v51 }
  0x45   : > { %1020 = vmatpush.msra.mxu1 %v976_v18  ;;  %v2354_v21 = vld [vmem:[%s3201_s5] ss:$0 sm:$0xff]  ;;  %s3203_s29 = scalar_lea.vmem %s3202_s26, %s2503_s20  ;;  %1151 = vmatpush.msra.mxu3 %v1105_v51  ;;  %s2383_s26 = smov 127  }
  0x46   : > { %2279 = vmatmul.msk.f32.gmra.mxu0 %vm896_vm4, %v2611_v10  ;;  %v2664_v50 = vld [vmem:[%s3203_s29] ss:$0 sm:$0xff]  ;;  %1128 = vmatpush.msra.mxu2 %v1104_v52  ;;  %s3205_s23 = scalar_lea.vmem %s3204_s18, %s2503_s20  ;;  %s2384_s29 = smov 126  }
  0x47   : > { %1021 = vmatpush.msra.mxu1 %v975_v19  ;;  %1152 = vmatpush.msra.mxu3 %v1104_v52  ;;  %v1056_v19 = vlaneseq  ;;  %s3210_s28 = scalar_lea.vmem %s3209_s21, %s2503_s20  ;;  %s2387_s18 = smov 2  }
  0x48   : > { %1129 = vmatpush.msra.mxu2 %v1103_v54 }
  0x49   : > { %1022 = vmatpush.msra.mxu1 %v974_v20  ;;  %1153 = vmatpush.msra.mxu3 %v1103_v54 }
  0x4a   : > { %1130 = vmatpush.msra.mxu2 %v1102_v57 }
  0x4b   : > { %1154 = vmatpush.msra.mxu3 %v1102_v57 }
  0x4c   : > { %1131 = vmatpush.msra.mxu2 %v1101_v60 }
  0x4d   : > { %1155 = vmatpush.msra.mxu3 %v1101_v60 }
  0x4e   : > { %2280 = vmatmul.msk.f32.gmra.mxu0 %vm896_vm4, %v2615_v11 }
  0x56   : > { %2281 = vmatmul.msk.f32.gmra.mxu0 %vm896_vm4, %v2619_v12 }
  0x5e   : > { %2282 = vmatmul.msk.f32.gmra.mxu0 %vm896_vm4, %v887_v14 }
  0x66   : > { %2283 = vmatmul.msk.f32.gmra.mxu0 %vm896_vm4, %v888_v15 }
  0x6e   : > { %2284 = vmatmul.msk.f32.gmra.mxu0 %vm896_vm4, %v889_v16 }
  0x76   : > { %2285 = vmatmul.msk.f32.gmra.mxu0 %vm896_vm4, %v890_v17 }
  0xbb   : > { %v942_v22 = vpop.f32.mrf.mxu0 }
  0xbc   : > { %v943_v23 = vadd.f32 %v2354_v21, %v942_v22 }
  0xbe   : > { %v966_v24 = vmax.f32 %v943_v23, 0.0  ;;  %v1057_v23 = vshrl.u32 %v1056_v19, 7 }
  0xc0   : > { %2286 = vmatmul.msk.f32.vlgmr.msra.gmra.mxu1 %vm982_vm5, %v966_v24  ;;  %vm1058_vm7 = vcmp.eq.s32.totalorder %v1057_v23, 0  ;;  %vm1080_vm8 = vcmp.eq.s32.totalorder %v1057_v23, 1  ;;  %v1194_v23 = vld [vmem:[%s2539_s4 + $0xa8] sm:$0xff] }
  0xc3   : > { %v945_v25 = vpop.f32.mrf.mxu0 }
  0xc4   : > { %v946_v26 = vadd.f32 %v2354_v21, %v945_v25 }
  0xc6   : > { %v967_v27 = vmax.f32 %v946_v26, 0.0 }
  0xc8   : > { %2287 = vmatmul.msk.f32.gmra.mxu1 %vm982_vm5, %v967_v27 }
  0xcb   : > { %v948_v28 = vpop.f32.mrf.mxu0 }
  0xcc   : > { %v949_v29 = vadd.f32 %v2354_v21, %v948_v28 }
  0xce   : > { %v968_v30 = vmax.f32 %v949_v29, 0.0 }
  0xd0   : > { %2288 = vmatmul.msk.f32.gmra.mxu1 %vm982_vm5, %v968_v30 }
  0xd3   : > { %v951_v31 = vpop.f32.mrf.mxu0 }
  0xd4   : > { %v952_v32 = vadd.f32 %v2354_v21, %v951_v31 }
  0xd6   : > { %v969_v33 = vmax.f32 %v952_v32, 0.0 }
  0xd8   : > { %2289 = vmatmul.msk.f32.gmra.mxu1 %vm982_vm5, %v969_v33 }
  0xdb   : > { %v954_v34 = vpop.f32.mrf.mxu0 }
  0xdc   : > { %v955_v35 = vadd.f32 %v2354_v21, %v954_v34 }
  0xde   : > { %v970_v36 = vmax.f32 %v955_v35, 0.0 }
  0xe0   : > { %2290 = vmatmul.msk.f32.gmra.mxu1 %vm982_vm5, %v970_v36 }
  0xe3   : > { %v957_v37 = vpop.f32.mrf.mxu0 }
  0xe4   : > { %v958_v38 = vadd.f32 %v2354_v21, %v957_v37 }
  0xe6   : > { %v971_v39 = vmax.f32 %v958_v38, 0.0 }
  0xe8   : > { %2291 = vmatmul.msk.f32.gmra.mxu1 %vm982_vm5, %v971_v39 }
  0xeb   : > { %v960_v40 = vpop.f32.mrf.mxu0 }
  0xec   : > { %v961_v41 = vadd.f32 %v2354_v21, %v960_v40 }
  0xee   : > { %v972_v42 = vmax.f32 %v961_v41, 0.0 }
  0xf0   : > { %2292 = vmatmul.msk.f32.gmra.mxu1 %vm982_vm5, %v972_v42 }
  0xf3   : > { %v963_v43 = vpop.f32.mrf.mxu0 }
  0xf4   : > { %v964_v44 = vadd.f32 %v2354_v21, %v963_v43 }
  0xf6   : > { %v973_v45 = vmax.f32 %v964_v44, 0.0 }
  0xf8   : > { %2293 = vmatmul.msk.f32.gmra.mxu1 %vm982_vm5, %v973_v45 }
 0x13d   : > { %v1024_v48 = vpop.f32.mrf.mxu1 }
 0x13e   : > { %v1025_v53 = vadd.f32 %v2664_v50, %v1024_v48 }
 0x140   : > { %v1048_v58 = vmax.f32 %v1025_v53, 0.0 }
 0x142   : > { %v1060_v62 = vsel %vm1059_vm6, %v1048_v58, -inf }
 0x145   : > { %v1027_v55 = vpop.f32.mrf.mxu1 }
 0x146   : > { %v1028_v56 = vadd.f32 %v2664_v50, %v1027_v55 }
 0x148   : > { %v1049_v59 = vmax.f32 %v1028_v56, 0.0 }
 0x14a   : > { %v1061_v61 = vsel %vm1059_vm6, %v1049_v59, -inf }
 0x14b   : > { %v1062_v63 = vmax.f32 %v1060_v62, %v1061_v61  ;;  %v1188_v61 = vld [vmem:[%s2539_s4 + $0x78] sm:$0xff] }
 0x14c   : > { %v1204_v62 = vld [vmem:[%s2539_s4 + $0xf8] sm:$0xff]  ;;  %1250 = vmatpush.msrb.mxu0 %v1188_v61  ;;  %1209 = vmatpush.msrb.mxu2 %v1188_v61 }
 0x14d   : > { %v1030_v0 = vpop.f32.mrf.mxu1  ;;  %v1063_v1 = vrot.slane %v1062_v63, 4  ;;  %1270 = vmatpush.msrb.mxu1 %v1204_v62  ;;  %1229 = vmatpush.msrb.mxu3 %v1204_v62  ;;  %v1326_v61 = vld [vmem:[%s2548_s22 + $0xd8] sm:$0xff]  ;;  %v1309_v62 = vld [vmem:[%s2548_s22 + $0x50] sm:$0xff] }
 0x14e   : > { %v1031_v2 = vadd.f32 %v2664_v50, %v1030_v0  ;;  %v1203_v0 = vld [vmem:[%s2539_s4 + $0xf0] sm:$0xff] }
 0x14f   : > { %v1064_v3 = vmax.f32 %v1062_v63, %v1063_v1  ;;  %v1187_v63 = vld [vmem:[%s2539_s4 + $0x70] sm:$0xff]  ;;  %v1186_v1 = vld [vmem:[%s2539_s4 + $0x68] sm:$0xff]  ;;  %1271 = vmatpush.msrb.mxu1 %v1203_v0  ;;  %1230 = vmatpush.msrb.mxu3 %v1203_v0 }
 0x150   : > { %v1050_v5 = vmax.f32 %v1031_v2, 0.0  ;;  %v1202_v2 = vld [vmem:[%s2539_s4 + $0xe8] sm:$0xff]  ;;  %1251 = vmatpush.msrb.mxu0 %v1187_v63  ;;  %1210 = vmatpush.msrb.mxu2 %v1187_v63  ;;  %v2759_v63 = vld [vmem:[%s2580_s12 + $0x60] sm:$0xff]  ;;  %v1325_v0 = vld [vmem:[%s2548_s22 + $0xd0] sm:$0xff] }
 0x151   : > { %v1065_v7 = vrot.slane %v1064_v3, 2  ;;  %1272 = vmatpush.msrb.mxu1 %v1202_v2  ;;  %1231 = vmatpush.msrb.mxu3 %v1202_v2  ;;  %v2765_v2 = vld [vmem:[%s2580_s12 + $0x58] sm:$0xff] }
 0x152   : > { %v1081_v13 = vsel %vm1059_vm6, %v1050_v5, -inf  ;;  %1252 = vmatpush.msrb.mxu0 %v1186_v1  ;;  %v1184_v5 = vld [vmem:[%s2539_s4 + $0x58] sm:$0xff]  ;;  %1211 = vmatpush.msrb.mxu2 %v1186_v1  ;;  %v1308_v1 = vld [vmem:[%s2548_s22 + $0x48] sm:$0xff] }
 0x153   : > { %v1066_v16 = vmax.f32 %v1064_v3, %v1065_v7  ;;  %v1185_v3 = vld [vmem:[%s2539_s4 + $0x60] sm:$0xff]  ;;  %v1183_v7 = vld [vmem:[%s2539_s4 + $0x50] sm:$0xff] }
 0x154   : > { %1253 = vmatpush.msrb.mxu0 %v1185_v3  ;;  %1212 = vmatpush.msrb.mxu2 %v1185_v3  ;;  %v1324_v3 = vld [vmem:[%s2548_s22 + $0xc8] sm:$0xff] }
 0x155   : > { %v1033_v4 = vpop.f32.mrf.mxu1  ;;  %v1067_v21 = vrot.slane %v1066_v16, 1 }
 0x156   : > { %v1034_v6 = vadd.f32 %v2664_v50, %v1033_v4  ;;  %v1201_v4 = vld [vmem:[%s2539_s4 + $0xe0] sm:$0xff]  ;;  %1254 = vmatpush.msrb.mxu0 %v1184_v5  ;;  %1213 = vmatpush.msrb.mxu2 %v1184_v5  ;;  %v2771_v5 = vld [vmem:[%s2580_s12 + $0x50] sm:$0xff] }
 0x157   : > { %v1068_v26 = vmax.f32 %v1066_v16, %v1067_v21  ;;  %1273 = vmatpush.msrb.mxu1 %v1201_v4  ;;  %1232 = vmatpush.msrb.mxu3 %v1201_v4  ;;  %v1197_v16 = vld [vmem:[%s2539_s4 + $0xc0] sm:$0xff]  ;;  %v1195_v21 = vld [vmem:[%s2539_s4 + $0xb0] sm:$0xff] }
 0x158   : > { %v1051_v8 = vmax.f32 %v1034_v6, 0.0  ;;  %v1200_v6 = vld [vmem:[%s2539_s4 + $0xd8] sm:$0xff]  ;;  %1255 = vmatpush.msrb.mxu0 %v1183_v7  ;;  %1214 = vmatpush.msrb.mxu2 %v1183_v7  ;;  %v1307_v4 = vld [vmem:[%s2548_s22 + $0x40] sm:$0xff] }
 0x159   : > { %v1069_v33 = vsel %vm1058_vm7, %v1068_v26, 0.0  ;;  %1274 = vmatpush.msrb.mxu1 %v1200_v6  ;;  %1233 = vmatpush.msrb.mxu3 %v1200_v6  ;;  %v1193_v26 = vld [vmem:[%s2539_s4 + $0xa0] sm:$0xff]  ;;  %v1306_v7 = vld [vmem:[%s2548_s22 + $0x38] sm:$0xff] }
 0x15a   : > { %v1082_v14 = vsel %vm1059_vm6, %v1051_v8, -inf  ;;  %v1199_v8 = vld [vmem:[%s2539_s4 + $0xd0] sm:$0xff]  ;;  %v1323_v6 = vld [vmem:[%s2548_s22 + $0xc0] sm:$0xff] }
 0x15b   : > { %v1083_v15 = vmax.f32 %v1081_v13, %v1082_v14  ;;  %v1182_v13 = vld [vmem:[%s2539_s4 + $0x48] sm:$0xff]  ;;  %1275 = vmatpush.msrb.mxu1 %v1199_v8  ;;  %1234 = vmatpush.msrb.mxu3 %v1199_v8 }
 0x15c   : > { %v1198_v14 = vld [vmem:[%s2539_s4 + $0xc8] sm:$0xff]  ;;  %1256 = vmatpush.msrb.mxu0 %v1182_v13  ;;  %1215 = vmatpush.msrb.mxu2 %v1182_v13  ;;  %v1322_v13 = vld [vmem:[%s2548_s22 + $0xb8] sm:$0xff] }
 0x15d   : > { %v1084_v17 = vrot.slane %v1083_v15, 4  ;;  %v1036_v18 = vpop.f32.mrf.mxu1  ;;  %1276 = vmatpush.msrb.mxu1 %v1198_v14  ;;  %1235 = vmatpush.msrb.mxu3 %v1198_v14  ;;  %v2777_v8 = vld [vmem:[%s2580_s12 + $0x48] sm:$0xff]  ;;  %v1305_v14 = vld [vmem:[%s2548_s22 + $0x30] sm:$0xff] }
 0x15e   : > { %v1037_v25 = vadd.f32 %v2664_v50, %v1036_v18  ;;  %v1196_v18 = vld [vmem:[%s2539_s4 + $0xb8] sm:$0xff] }
 0x15f   : > { %v1085_v20 = vmax.f32 %v1083_v15, %v1084_v17  ;;  %v1181_v15 = vld [vmem:[%s2539_s4 + $0x40] sm:$0xff]  ;;  %v1180_v17 = vld [vmem:[%s2539_s4 + $0x38] sm:$0xff]  ;;  %1277 = vmatpush.msrb.mxu1 %v1197_v16  ;;  %1236 = vmatpush.msrb.mxu3 %v1197_v16 }
 0x160   : > { %v1052_v30 = vmax.f32 %v1037_v25, 0.0  ;;  %1257 = vmatpush.msrb.mxu0 %v1181_v15  ;;  %1216 = vmatpush.msrb.mxu2 %v1181_v15  ;;  %v1177_v25 = vld [vmem:[%s2539_s4 + $0x20] sm:$0xff] }
 0x161   : > { %v1086_v22 = vrot.slane %v1085_v20, 2  ;;  %1278 = vmatpush.msrb.mxu1 %v1196_v18  ;;  %1237 = vmatpush.msrb.mxu3 %v1196_v18  ;;  %v2783_v15 = vld [vmem:[%s2580_s12 + $0x40] sm:$0xff]  ;;  %v1304_v18 = vld [vmem:[%s2548_s22 + $0x28] sm:$0xff] }
 0x162   : > { %v1070_v36 = vsel %vm1059_vm6, %v1052_v30, -inf  ;;  %1258 = vmatpush.msrb.mxu0 %v1180_v17  ;;  %1217 = vmatpush.msrb.mxu2 %v1180_v17  ;;  %v2357_v16 = vld [vmem:[%s3206_s25] ss:$0 sm:$0xff]  ;;  %v1321_v17 = vld [vmem:[%s2548_s22 + $0xb0] sm:$0xff] }
 0x163   : > { %v1087_v24 = vmax.f32 %v1085_v20, %v1086_v22  ;;  %v1179_v20 = vld [vmem:[%s2539_s4 + $0x30] sm:$0xff]  ;;  %v1178_v22 = vld [vmem:[%s2539_s4 + $0x28] sm:$0xff]  ;;  %1279 = vmatpush.msrb.mxu1 %v1195_v21  ;;  %1238 = vmatpush.msrb.mxu3 %v1195_v21 }
 0x164   : > { %1259 = vmatpush.msrb.mxu0 %v1179_v20  ;;  %1218 = vmatpush.msrb.mxu2 %v1179_v20  ;;  %v2794_v20 = vld [vmem:[%s2580_s12 + $0x38] sm:$0xff]  ;;  %v1320_v21 = vld [vmem:[%s2548_s22 + $0xa8] sm:$0xff] }
 0x165   : > { %v1039_v27 = vpop.f32.mrf.mxu1  ;;  %v1088_v28 = vrot.slane %v1087_v24, 1  ;;  %1280 = vmatpush.msrb.mxu1 %v1194_v23  ;;  %1239 = vmatpush.msrb.mxu3 %v1194_v23  ;;  %v1303_v23 = vld [vmem:[%s2548_s22 + $0x20] sm:$0xff] }
 0x166   : > { %v1040_v29 = vadd.f32 %v2664_v50, %v1039_v27  ;;  %1260 = vmatpush.msrb.mxu0 %v1178_v22  ;;  %1219 = vmatpush.msrb.mxu2 %v1178_v22 }
 0x167   : > { %v1089_v31 = vmax.f32 %v1087_v24, %v1088_v28  ;;  %v2356_v24 = vld [vmem:[%s3205_s23] ss:$0 sm:$0xff]  ;;  %v1176_v28 = vld [vmem:[%s2539_s4 + $0x18] sm:$0xff]  ;;  %1281 = vmatpush.msrb.mxu1 %v1193_v26  ;;  %1240 = vmatpush.msrb.mxu3 %v1193_v26  ;;  %s2388_s23 = smov 125  }
 0x168   : > { %v1053_v32 = vmax.f32 %v1040_v29, 0.0  ;;  %v1192_v29 = vld [vmem:[%s2539_s4 + $0x98] sm:$0xff]  ;;  %1261 = vmatpush.msrb.mxu0 %v1177_v25  ;;  %1220 = vmatpush.msrb.mxu2 %v1177_v25  ;;  %v1319_v26 = vld [vmem:[%s2548_s22 + $0xa0] sm:$0xff] }
 0x169   : > { %v1090_v34 = vsel %vm1080_vm8, %v1089_v31, %v1069_v33  ;;  %v1175_v31 = vld [vmem:[%s2539_s4 + $0x10] sm:$0xff]  ;;  %1282 = vmatpush.msrb.mxu1 %v1192_v29  ;;  %1241 = vmatpush.msrb.mxu3 %v1192_v29  ;;  %v2806_v29 = vld [vmem:[%s2580_s12 + $0x28] sm:$0xff] }
 0x16a   : > { %v1071_v35 = vsel %vm1059_vm6, %v1053_v32, -inf  ;;  %2294 = vmatmul.msk.f32.vlgmr.msra.gmra.mxu2 %vm1059_vm6, %v1090_v34  ;;  %v1191_v32 = vld [vmem:[%s2539_s4 + $0x90] sm:$0xff]  ;;  %1262 = vmatpush.msrb.mxu0 %v1176_v28 }
 0x16b   : > { %v1072_v37 = vmax.f32 %v1070_v36, %v1071_v35  ;;  %1221 = vmatpush.msrb.mxu2 %v1176_v28  ;;  %1283 = vmatpush.msrb.mxu1 %v1191_v32  ;;  %v1302_v28 = vld [vmem:[%s2548_s22 + $0x18] sm:$0xff] }
 0x16c   : > { %1263 = vmatpush.msrb.mxu0 %v1175_v31  ;;  %1242 = vmatpush.msrb.mxu3 %v1191_v32  ;;  %v1301_v32 = vld [vmem:[%s2548_s22 + $0x10] sm:$0xff] }
 0x16d   : > { %v1042_v38 = vpop.f32.mrf.mxu1  ;;  %v1073_v39 = vrot.slane %v1072_v37, 4  ;;  %1222 = vmatpush.msrb.mxu2 %v1175_v31  ;;  %v1318_v31 = vld [vmem:[%s2548_s22 + $0x98] sm:$0xff] }
 0x16e   : > { %v1043_v40 = vadd.f32 %v2664_v50, %v1042_v38  ;;  %v1174_v38 = vld [vmem:[%s2539_s4 + $0x8] sm:$0xff] }
 0x16f   : > { %v1074_v41 = vmax.f32 %v1072_v37, %v1073_v39  ;;  %v1190_v39 = vld [vmem:[%s2539_s4 + $0x88] sm:$0xff]  ;;  %1223 = vmatpush.msrb.mxu2 %v1174_v38  ;;  %1264 = vmatpush.msrb.mxu0 %v1174_v38 }
 0x170   : > { %v1054_v43 = vmax.f32 %v1043_v40, 0.0  ;;  %1243 = vmatpush.msrb.mxu3 %v1190_v39  ;;  %v1173_v40 = vld [vmem:[%s2539_s4] sm:$0xff]  ;;  %1284 = vmatpush.msrb.mxu1 %v1190_v39  ;;  %v1300_v38 = vld [vmem:[%s2548_s22 + $0x8] sm:$0xff] }
 0x171   : > { %v1075_v45 = vrot.slane %v1074_v41, 2  ;;  %1224 = vmatpush.msrb.mxu2 %v1173_v40  ;;  %1265 = vmatpush.msrb.mxu0 %v1173_v40  ;;  %v1316_v40 = vld [vmem:[%s2548_s22 + $0x88] sm:$0xff] }
 0x172   : > { %v1091_v47 = vsel %vm1059_vm6, %v1054_v43, -inf }
 0x173   : > { %v1076_v51 = vmax.f32 %v1074_v41, %v1075_v45  ;;  %v1189_v41 = vld [vmem:[%s2539_s4 + $0x80] sm:$0xff]  ;;  %s2390_s4 = smov 3  }
 0x174   : > { %1244 = vmatpush.msrb.mxu3 %v1189_v41  ;;  %1285 = vmatpush.msrb.mxu1 %v1189_v41  ;;  %v2820_v41 = vld [vmem:[%s2580_s12 + $0x18] sm:$0xff] }
 0x175   : > { %v1045_v42 = vpop.f32.mrf.mxu1  ;;  %v1077_v54 = vrot.slane %v1076_v51, 1 }
 0x176   : > { %v1046_v44 = vadd.f32 %v2664_v50, %v1045_v42 }
 0x177   : > { %v1078_v50 = vmax.f32 %v1076_v51, %v1077_v54  ;;  %v1313_v51 = vld [vmem:[%s2548_s22 + $0x70] sm:$0xff] }
 0x178   : > { %v1055_v46 = vmax.f32 %v1046_v44, 0.0  ;;  %v1329_v54 = vld [vmem:[%s2548_s22 + $0xf0] sm:$0xff] }
 0x179   : > { %v1079_v59 = vsel %vm1058_vm7, %v1078_v50, 0.0  ;;  %v2744_v50 = vld [vmem:[%s2580_s12 + $0x78] sm:$0xff]  ;;  %vm2004_vm7 = vcmask 50176  }
 0x17a   : > { %v1092_v48 = vsel %vm1059_vm6, %v1055_v46, -inf  ;;  %1441 = vmatpush.msra.mxu1 %v2744_v50 }
 0x17b   : > { %v1093_v49 = vmax.f32 %v1091_v47, %v1092_v48 }
 0x17d   : > { %v1094_v52 = vrot.slane %v1093_v49, 4 }
 0x17f   : > { %v1095_v53 = vmax.f32 %v1093_v49, %v1094_v52  ;;  %v1314_v49 = vld [vmem:[%s2548_s22 + $0x78] sm:$0xff] }
 0x180   : > { %1335 = vmatpush.msra.mxu2 %v1314_v49  ;;  %v1330_v52 = vld [vmem:[%s2548_s22 + $0xf8] sm:$0xff]  ;;  %v1431_v49 = vld [vmem:[%s2580_s12 + $0xa0] sm:$0xff] }
 0x181   : > { %v1096_v55 = vrot.slane %v1095_v53, 2 }
 0x182   : > { %1336 = vmatpush.msra.mxu2 %v1313_v51  ;;  %v1430_v51 = vld [vmem:[%s2580_s12 + $0x98] sm:$0xff] }
 0x183   : > { %v1097_v56 = vmax.f32 %v1095_v53, %v1096_v55  ;;  %v1312_v53 = vld [vmem:[%s2548_s22 + $0x68] sm:$0xff] }
 0x184   : > { %v1328_v55 = vld [vmem:[%s2548_s22 + $0xe8] sm:$0xff]  ;;  %1337 = vmatpush.msra.mxu2 %v1312_v53  ;;  %v1429_v53 = vld [vmem:[%s2580_s12 + $0x90] sm:$0xff] }
 0x185   : > { %v1098_v57 = vrot.slane %v1097_v56, 1 }
 0x187   : > { %v1099_v58 = vmax.f32 %v1097_v56, %v1098_v57  ;;  %v1311_v56 = vld [vmem:[%s2548_s22 + $0x60] sm:$0xff] }
 0x188   : > { %v1327_v57 = vld [vmem:[%s2548_s22 + $0xe0] sm:$0xff]  ;;  %1338 = vmatpush.msra.mxu2 %v1311_v56 }
 0x189   : > { %v1100_v60 = vsel %vm1080_vm8, %v1099_v58, %v1079_v59  ;;  %v2749_v58 = vld [vmem:[%s2580_s12 + $0x70] sm:$0xff]  ;;  %v1310_v59 = vld [vmem:[%s2548_s22 + $0x58] sm:$0xff]  ;;  %v1411_v56 = vld [vmem:[%s2580_s12] sm:$0xff] }
 0x18a   : > { %2295 = vmatmul.msk.f32.vlgmr.msra.gmra.mxu3 %vm1059_vm6, %v1100_v60  ;;  %v2753_v60 = vld [vmem:[%s2580_s12 + $0x68] sm:$0xff]  ;;  %1442 = vmatpush.msra.mxu1 %v2749_v58 }
 0x18b   : > { %1355 = vmatpush.msra.mxu3 %v1330_v52  ;;  %1339 = vmatpush.msra.mxu2 %v1310_v59  ;;  %v1413_v52 = vld [vmem:[%s2580_s12 + $0x10] sm:$0xff]  ;;  %v1383_v59 = vld [vmem:[%s2557_s7 + $0x38] sm:$0xff] }
 0x18c   : > { %1443 = vmatpush.msra.mxu1 %v2753_v60  ;;  %1399 = vmatpush.msra.mxu0 %v1383_v59 }
 0x18d   : > { %1356 = vmatpush.msra.mxu3 %v1329_v54  ;;  %1340 = vmatpush.msra.mxu2 %v1309_v62  ;;  %v1412_v54 = vld [vmem:[%s2580_s12 + $0x8] sm:$0xff] }
 0x18e   : > { %1444 = vmatpush.msra.mxu1 %v2759_v63  ;;  %v1381_v62 = vld [vmem:[%s2557_s7 + $0x28] sm:$0xff] }
 0x18f   : > { %1357 = vmatpush.msra.mxu3 %v1328_v55  ;;  %1341 = vmatpush.msra.mxu2 %v1308_v1  ;;  %v1428_v55 = vld [vmem:[%s2580_s12 + $0x88] sm:$0xff]  ;;  %v1379_v1 = vld [vmem:[%s2557_s7 + $0x18] sm:$0xff] }
 0x190   : > { %1445 = vmatpush.msra.mxu1 %v2765_v2 }
 0x191   : > { %1358 = vmatpush.msra.mxu3 %v1327_v57  ;;  %1342 = vmatpush.msra.mxu2 %v1307_v4  ;;  %v1427_v57 = vld [vmem:[%s2580_s12 + $0x80] sm:$0xff] }
 0x192   : > { %1446 = vmatpush.msra.mxu1 %v2771_v5 }
 0x193   : > { %1359 = vmatpush.msra.mxu3 %v1326_v61  ;;  %1343 = vmatpush.msra.mxu2 %v1306_v7  ;;  %v1382_v61 = vld [vmem:[%s2557_s7 + $0x30] sm:$0xff]  ;;  %v1376_v7 = vld [vmem:[%s2557_s7] sm:$0xff] }
 0x194   : > { %1447 = vmatpush.msra.mxu1 %v2777_v8  ;;  %1400 = vmatpush.msra.mxu0 %v1382_v61 }
 0x195   : > { %1360 = vmatpush.msra.mxu3 %v1325_v0  ;;  %1344 = vmatpush.msra.mxu2 %v1305_v14  ;;  %v1380_v0 = vld [vmem:[%s2557_s7 + $0x20] sm:$0xff] }
 0x196   : > { %1448 = vmatpush.msra.mxu1 %v2783_v15  ;;  %1401 = vmatpush.msra.mxu0 %v1381_v62  ;;  %v1482_v14 = vld [vmem:[%s2571_s10] sm:$0xff] }
 0x197   : > { %1361 = vmatpush.msra.mxu3 %v1324_v3  ;;  %1345 = vmatpush.msra.mxu2 %v1304_v18  ;;  %v1378_v3 = vld [vmem:[%s2557_s7 + $0x10] sm:$0xff] }
 0x198   : > { %1449 = vmatpush.msra.mxu1 %v2794_v20  ;;  %1402 = vmatpush.msra.mxu0 %v1380_v0 }
 0x199   : > { %1362 = vmatpush.msra.mxu3 %v1323_v6  ;;  %1346 = vmatpush.msra.mxu2 %v1303_v23  ;;  %v1377_v6 = vld [vmem:[%s2557_s7 + $0x8] sm:$0xff]  ;;  %s3211_s7 = scalar_lea.vmem %s3159_s17, %s2503_s20 }
 0x19a   : > { %1403 = vmatpush.msra.mxu0 %v1379_v1  ;;  %v2369_v1 = vld [vmem:[#allocation2 + $0x18] sm:$0xff] }
 0x19b   : > { %1363 = vmatpush.msra.mxu3 %v1322_v13  ;;  %1347 = vmatpush.msra.mxu2 %v1302_v28  ;;  %v2360_v28 = vld [vmem:[%s3210_s28] ss:$0 sm:$0xff] }
 0x19c   : > { %1404 = vmatpush.msra.mxu0 %v1378_v3 }
 0x19d   : > { %1364 = vmatpush.msra.mxu3 %v1321_v17  ;;  %1348 = vmatpush.msra.mxu2 %v1301_v32 }
 0x19e   : > { %1405 = vmatpush.msra.mxu0 %v1377_v6 }
 0x19f   : > { %1365 = vmatpush.msra.mxu3 %v1320_v21  ;;  %1349 = vmatpush.msra.mxu2 %v1300_v38  ;;  %v2903_v38 = vld [vmem:[#allocation3] sm:$0x3] }
 0x1a0   : > { %1406 = vmatpush.msra.mxu0 %v1376_v7 }
 0x1a1   : > { %1366 = vmatpush.msra.mxu3 %v1319_v26 }
 0x1a3   : > { %1367 = vmatpush.msra.mxu3 %v1318_v31 }
 0x1ed   : > { %v1133_v27 = vpop.f32.mrf.mxu2 }
 0x1ee   : > { %v1134_v30 = vadd.f32 %v2356_v24, %v1133_v27 }
 0x1f0   : > { %v1136_v35 = vmax.f32 %v1134_v30, 0.0 }
 0x20d   : > { %v1157_v33 = vpop.f32.mrf.mxu3 }
 0x20e   : > { %v1158_v34 = vadd.f32 %v2356_v24, %v1157_v33  ;;  %v2800_v24 = vld [vmem:[%s2580_s12 + $0x30] sm:$0xff] }
 0x20f   : > { %1450 = vmatpush.msra.mxu1 %v2800_v24 }
 0x210   : > { %v1160_v36 = vmax.f32 %v1158_v34, 0.0 }
 0x211   : > { %1451 = vmatpush.msra.mxu1 %v2806_v29 }
 0x212   : > { %v2332_v37 = vpack.i.bf16 %v1136_v35, %v1160_v36 }
 0x214   : > { %2333 = vrot.lane.b32.xlu0 %v2332_v37, %s2379_s24 }
 0x286   : > { %v2334_v42 = vpop.permute.xlu0 %2333 }
 0x287   : > { %v2336_v43 = vunpack.i.h.bf16 %v2334_v42  ;;  %v2335_v44 = vunpack.i.l.bf16 %v2334_v42 }
 0x289   : > { %v1165_v45 = vsel %vm1059_vm6, %v1136_v35, %v2335_v44  ;;  %v1171_v46 = vsel %vm1059_vm6, %v2336_v43, %v1160_v36  ;;  %v1170_v47 = vsel %vm1059_vm6, %v1160_v36, %v2336_v43  ;;  %v1172_v48 = vsel %vm1059_vm6, %v2335_v44, %v1136_v35  ;;  %v1317_v35 = vld [vmem:[%s2548_s22 + $0x90] sm:$0xff]  ;;  %v2814_v36 = vld [vmem:[%s2580_s12 + $0x20] sm:$0xff]  ;;  %v1434_v44 = vld [vmem:[%s2580_s12 + $0xb8] sm:$0xff] }
 0x28a   : > { %1225 = vmatmul.f32.vlgmr.msrb.gmra.mxu2 %v1165_v45  ;;  %1245 = vmatmul.f32.vlgmr.msrb.gmra.mxu3 %v1171_v46  ;;  %v1299_v43 = vld [vmem:[%s2548_s22] sm:$0xff] }
 0x28b   : > { %1266 = vmatmul.f32.vlgmr.msrb.gmra.mxu0 %v1170_v47  ;;  %1286 = vmatmul.f32.vlgmr.msrb.gmra.mxu1 %v1172_v48  ;;  %v1315_v46 = vld [vmem:[%s2548_s22 + $0x80] sm:$0xff]  ;;  %v1433_v47 = vld [vmem:[%s2580_s12 + $0xb0] sm:$0xff]  ;;  %v1432_v48 = vld [vmem:[%s2580_s12 + $0xa8] sm:$0xff]  ;;  %s3207_s12 = scalar_lea.vmem %s3153_s11, %s2503_s20 }
 0x28c   : > { %1368 = vmatpush.msra.mxu3 %v1317_v35  ;;  %1452 = vmatpush.msra.mxu1 %v2814_v36 }
 0x28d   : > { %1350 = vmatpush.msra.mxu2 %v1299_v43  ;;  %1519 = vmatpush.msrb.mxu0 %v2744_v50  ;;  %v1489_v50 = vld [vmem:[%s2571_s10 + $0x38] sm:$0xff]  ;;  %v2382_v43 = vmov 2  }
 0x28e   : > { %1369 = vmatpush.msra.mxu3 %v1316_v40  ;;  %1453 = vmatpush.msra.mxu1 %v2820_v41 }
 0x28f   : > { %1469 = vmatpush.msrb.mxu2 %v1434_v44  ;;  %1520 = vmatpush.msrb.mxu0 %v2749_v58  ;;  %v1488_v58 = vld [vmem:[%s2571_s10 + $0x30] sm:$0xff] }
 0x290   : > { %1370 = vmatpush.msra.mxu3 %v1315_v46  ;;  %1454 = vmatpush.msra.mxu1 %v1413_v52 }
 0x291   : > { %1470 = vmatpush.msrb.mxu2 %v1433_v47  ;;  %1521 = vmatpush.msrb.mxu0 %v2753_v60  ;;  %v1487_v60 = vld [vmem:[%s2571_s10 + $0x28] sm:$0xff] }
 0x292   : > { %1455 = vmatpush.msra.mxu1 %v1412_v54  ;;  %1505 = vmatpush.msrb.mxu3 %v1489_v50 }
 0x293   : > { %1471 = vmatpush.msrb.mxu2 %v1432_v48  ;;  %1522 = vmatpush.msrb.mxu0 %v2759_v63  ;;  %v1486_v63 = vld [vmem:[%s2571_s10 + $0x20] sm:$0xff] }
 0x294   : > { %1456 = vmatpush.msra.mxu1 %v1411_v56  ;;  %1506 = vmatpush.msrb.mxu3 %v1488_v58 }
 0x295   : > { %1472 = vmatpush.msrb.mxu2 %v1431_v49  ;;  %1523 = vmatpush.msrb.mxu0 %v2765_v2  ;;  %v1485_v2 = vld [vmem:[%s2571_s10 + $0x18] sm:$0xff] }
 0x296   : > { %1507 = vmatpush.msrb.mxu3 %v1487_v60 }
 0x297   : > { %1473 = vmatpush.msrb.mxu2 %v1430_v51  ;;  %1524 = vmatpush.msrb.mxu0 %v2771_v5  ;;  %v1484_v5 = vld [vmem:[%s2571_s10 + $0x10] sm:$0xff] }
 0x298   : > { %1508 = vmatpush.msrb.mxu3 %v1486_v63 }
 0x299   : > { %1474 = vmatpush.msrb.mxu2 %v1429_v53  ;;  %1525 = vmatpush.msrb.mxu0 %v2777_v8  ;;  %v1483_v8 = vld [vmem:[%s2571_s10 + $0x8] sm:$0xff] }
 0x29a   : > { %1509 = vmatpush.msrb.mxu3 %v1485_v2 }
 0x29b   : > { %1475 = vmatpush.msrb.mxu2 %v1428_v55  ;;  %1526 = vmatpush.msrb.mxu0 %v2783_v15  ;;  %v2380_v15 = vmov 0  }
 0x29c   : > { %1510 = vmatpush.msrb.mxu3 %v1484_v5  ;;  %2337 = vset.pattern.permute.xlu1 %v2380_v15 }
 0x29d   : > { %1476 = vmatpush.msrb.mxu2 %v1427_v57  ;;  %1527 = vmatpush.msrb.mxu0 %v2794_v20  ;;  %v2358_v20 = vld [vmem:[%s3208_s8] ss:$0 sm:$0xff] }
 0x29e   : > { %1511 = vmatpush.msrb.mxu3 %v1483_v8  ;;  %2338 = vset.pattern.permute.xlu2 %v2380_v15 }
 0x29f   : > { %1528 = vmatpush.msrb.mxu0 %v2800_v24  ;;  %1722 = vperm.xlu2 %2338, %v2611_v10  }
 0x2a0   : > { %1512 = vmatpush.msrb.mxu3 %v1482_v14  ;;  %2339 = vset.pattern.permute.xlu0 %v2380_v15 }
 0x2a1   : > { %1529 = vmatpush.msrb.mxu0 %v2806_v29 }
 0x2a3   : > { %1530 = vmatpush.msrb.mxu0 %v2814_v36 }
 0x2a5   : > { %1531 = vmatpush.msrb.mxu0 %v2820_v41  ;;  %v2381_v41 = vmov 1  }
 0x2a7   : > { %1532 = vmatpush.msrb.mxu0 %v1413_v52  ;;  %2340 = vset.pattern.permute.xlu2 %v2381_v41 }
 0x2a9   : > { %1533 = vmatpush.msrb.mxu0 %v1412_v54 }
 0x2ab   : > { %1534 = vmatpush.msrb.mxu0 %v1411_v56 }
 0x2f9   : > { %v2941_v7 = vpop.permute.xlu2 %1722 }
 0x308   : > { %v1267_v22 = vpop.f32.mrf.mxu0  ;;  %v1287_v27 = vpop.f32.mrf.mxu1 }
 0x309   : > { %v1268_v25 = vadd.f32 %v2357_v16, %v1267_v22 }
 0x30b   : > { %v1288_v30 = vadd.f32 %v1287_v27, %v1268_v25 }
 0x30d   : > { %v1290_v33 = vmax.f32 %v1288_v30, 0.0  ;;  %v1226_v34 = vpop.f32.mrf.mxu2  ;;  %v1246_v39 = vpop.f32.mrf.mxu3 }
 0x30e   : > { %v1227_v37 = vadd.f32 %v2357_v16, %v1226_v34  ;;  %v2359_v16 = vld [vmem:[%s3207_s12] ss:$0 sm:$0xff] }
 0x30f   : > { %1296 = vrot.lane.b32.xlu1 %v1290_v33, %s2379_s24 }
 0x310   : > { %v1247_v42 = vadd.f32 %v1246_v39, %v1227_v37  ;;  %v1806_v39 = vmul.f32 %v2903_v38, %v2903_v38 }
 0x312   : > { %v1249_v45 = vmax.f32 %v1247_v42, 0.0  ;;  %v1807_v40 = vsel %vm1585_vm9, %v1806_v39, 0.0  ;;  %v2366_v42 = vld [vmem:[#allocation2] sm:$0xff] }
 0x313   : > { %1742 = vperm.xlu2 %2340, %v2366_v42  }
 0x314   : > { %1292 = vrot.lane.b32.xlu0 %v1249_v45, %s2379_s24  ;;  %v2915_v45 = vld [vmem:[#allocation2 + $0x10] sm:$0xff]  ;;  %s2389_s24 = smov 123  }
 0x317   : > { %1718 = vperm.xlu1 %2337, %v2607_v9  }
 0x31b   : > { %1746 = vperm.xlu2 %2340, %v2611_v10  }
 0x31c   : > { %1730 = vperm.xlu0 %2339, %v2619_v12  }
 0x323   : > { %1754 = vperm.xlu2 %2340, %v2619_v12  }
 0x324   : > { %2342 = vset.pattern.permute.xlu0 %v2382_v43 }
 0x32b   : > { %2341 = vset.pattern.permute.xlu2 %v2382_v43 }
 0x32c   : > { %1770 = vperm.xlu2 %2341, %v2366_v42  }
 0x334   : > { %1778 = vperm.xlu2 %2341, %v2915_v45  }
 0x33c   : > { %2344 = vset.pattern.permute.xlu2 %v2381_v41 }
 0x381   : > { %v2844_v4 = vpop.permute.xlu1 %1296 }
 0x382   : > { %1371 = vmatmul.f32.vlgmr.msra.gmra.mxu3 %v2844_v4 }
 0x383   : > { %1571 = vmatpush.msra.mxu3 %v1489_v50 }
 0x385   : > { %1572 = vmatpush.msra.mxu3 %v1488_v58 }
 0x386   : > { %v1293_v13 = vpop.permute.xlu0 %1292 }
 0x387   : > { %1351 = vmatmul.f32.vlgmr.msra.gmra.mxu2 %v1293_v13  ;;  %1457 = vmatmul.f32.vlgmr.msra.gmra.mxu1 %v1293_v13 }
 0x388   : > { %1547 = vmatpush.msra.mxu2 %v1434_v44  ;;  %1573 = vmatpush.msra.mxu3 %v1487_v60 }
 0x389   : > { %v2913_v44 = vpop.permute.xlu1 %1718 }
 0x38a   : > { %1548 = vmatpush.msra.mxu2 %v1433_v47  ;;  %1574 = vmatpush.msra.mxu3 %v1486_v63 }
 0x38c   : > { %1549 = vmatpush.msra.mxu2 %v1432_v48  ;;  %1575 = vmatpush.msra.mxu3 %v1485_v2 }
 0x38e   : > { %1550 = vmatpush.msra.mxu2 %v1431_v49  ;;  %1576 = vmatpush.msra.mxu3 %v1484_v5 }
 0x38f   : > { %2297 = vmatmul.msk.f32.vlgmr.msrb.gmra.mxu2 %vm1059_vm6, %v2844_v4 }
 0x390   : > { %1551 = vmatpush.msra.mxu2 %v1430_v51  ;;  %1577 = vmatpush.msra.mxu3 %v1483_v8 }
 0x392   : > { %1552 = vmatpush.msra.mxu2 %v1429_v53  ;;  %1578 = vmatpush.msra.mxu3 %v1482_v14  ;;  %v2974_v14 = vpop.permute.xlu0 %1730 }
 0x394   : > { %1553 = vmatpush.msra.mxu2 %v1428_v55 }
 0x396   : > { %1554 = vmatpush.msra.mxu2 %v1427_v57 }
 0x397   : > { %2299 = vmatmul.msk.f32.vlgmr.msra.gmra.mxu2 %vm1059_vm6, %v1293_v13  ;;  %v2950_v13 = vpop.permute.xlu2 %1742 }
 0x39f   : > { %v2960_v58 = vpop.permute.xlu2 %1746 }
 0x3a7   : > { %v2966_v60 = vpop.permute.xlu2 %1754 }
 0x3af   : > { %v2968_v63 = vpop.permute.xlu2 %1770 }
 0x3b7   : > { %v2970_v2 = vpop.permute.xlu2 %1778 }
 0x404   : > { %v1458_v22 = vpop.f32.mrf.mxu1 }
 0x405   : > { %v1372_v18 = vpop.f32.mrf.mxu3  ;;  %v1459_v24 = vadd.f32 %v2358_v20, %v1458_v22 }
 0x40a   : > { %v1352_v17 = vpop.f32.mrf.mxu2 }
 0x40b   : > { %v1353_v9 = vadd.f32 %v2359_v16, %v1352_v17 }
 0x40d   : > { %v1373_v21 = vadd.f32 %v1372_v18, %v1353_v9 }
 0x40f   : > { %v1375_v23 = vmax.f32 %v1373_v21, 0.0 }
 0x411   : > { %2296 = vmatmul.msk.f32.vlgmr.msra.gmra.mxu0 %vm1059_vm6, %v1375_v23 }
 0x412   : > { %v1478_v25 = vpop.f32.mrf.mxu2 }
 0x413   : > { %v1479_v26 = vadd.f32 %v1478_v25, %v1459_v24 }
 0x415   : > { %v1481_v27 = vmax.f32 %v1479_v26, 0.0 }
 0x417   : > { %2298 = vmatmul.msk.f32.vlgmr.msrb.gmra.mxu3 %vm1059_vm6, %v1481_v27 }
 0x419   : > { %1535 = vmatmul.f32.vlgmr.msrb.gmra.mxu0 %v2844_v4 }
 0x41a   : > { %v1556_v35 = vpop.f32.mrf.mxu2 }
 0x48e   : > { %v1408_v29 = vpop.f32.mrf.mxu0 }
 0x48f   : > { %v2897_v30 = vadd.f32 %v2360_v28, %v1408_v29 }
 0x491   : > { %v1584_v31 = vmul.f32 %v2897_v30, %v2897_v30 }
 0x493   : > { %v1586_v32 = vsel %vm1585_vm9, %v1584_v31, 0.0 }
 0x494   : > { %1587 = vadd.xlane.f32.xlu1 %v1586_v32 }
 0x496   : > { %v1536_v33 = vpop.f32.mrf.mxu0 }
 0x497   : > { %v1537_v34 = vadd.f32 %v2358_v20, %v1536_v33 }
 0x499   : > { %v1557_v36 = vadd.f32 %v1556_v35, %v1537_v34 }
 0x49b   : > { %v1559_v37 = vmax.f32 %v1557_v36, 0.0 }
 0x49d   : > { %2300 = vmatmul.msk.f32.vlgmr.msra.gmra.mxu3 %vm1059_vm6, %v1559_v37 }
 0x4ad   : > { %1726 = vperm.xlu1 %2337, %v2615_v11   ;;  %v2367_v11 = vld [vmem:[#allocation2 + $0x8] sm:$0xff] }
 0x4ae   : > { %1774 = vperm.xlu0 %2342, %v2367_v11  }
 0x4b5   : > { %2343 = vset.pattern.permute.xlu1 %v2382_v43 }
 0x4d7   : > { %1808 = vadd.xlane.f32.xlu1 %v1807_v40 }
 0x507   : > { %v1588_v46 = vpop.xlane.xlu1 %1587 }
 0x508   : > { %2362 = vrsqrt.f32 %v1588_v46  ;;  %vm1595_vm14 = vweird.f32 %v1588_v46 }
 0x50e   : > { %v2363_v47 = vpop.eup %2362 }
 0x50f   : > { %v1590_v51 = vmul.f32 %v2363_v47, %v1588_v46  ;;  %vm1596_vm13 = vweird.f32 %v2363_v47 }
 0x510   : > { %vm1597_vm15 = vmor %vm1595_vm14, %vm1596_vm13 }
 0x511   : > { %v1591_v54 = vmul.f32 %v2363_v47, %v1590_v51 }
 0x513   : > { %v1592_v57 = vmul.f32 0.5, %v1591_v54 }
 0x515   : > { %v1593_v62 = vsub.f32 1.5, %v1592_v57 }
 0x517   : > { %v1594_v0 = vmul.f32 %v2363_v47, %v1593_v62 }
 0x519   : > { %v1598_v3 = vsel %vm1597_vm15, %v2363_v47, %v1594_v0 }
 0x51a   : > { %v2928_v4 = vmul.f32 %v1598_v3, %v2897_v30 }
 0x51c   : > { %v2954_v50 = vmul.f32 %v2928_v4, %v2928_v4 }
 0x51f   : > { %v2919_v10 = vpop.permute.xlu1 %1726 }
 0x520   : > { %v2978_v9 = vpop.permute.xlu0 %1774 }
 0x54a   : > { %v1809_v12 = vpop.xlane.xlu1 %1808 }
 0x54b   : > { %2364 = vrsqrt.f32 %v1809_v12  ;;  %vm1816_vm11 = vweird.f32 %v1809_v12 }
 0x551   : > { %v2365_v48 = vpop.eup %2364 }
 0x552   : > { %v1811_v49 = vmul.f32 %v2365_v48, %v1809_v12  ;;  %vm1817_vm10 = vweird.f32 %v2365_v48 }
 0x553   : > { %vm1818_vm12 = vmor %vm1816_vm11, %vm1817_vm10 }
 0x554   : > { %v1812_v52 = vmul.f32 %v2365_v48, %v1811_v49 }
 0x556   : > { %v1813_v53 = vmul.f32 0.5, %v1812_v52 }
 0x558   : > { %v1814_v55 = vsub.f32 1.5, %v1813_v53 }
 0x55a   : > { %v1815_v56 = vmul.f32 %v2365_v48, %v1814_v55 }
 0x55c   : > { %v1819_v59 = vsel %vm1818_vm12, %v2365_v48, %v1815_v56 }
 0x55d   : > { %v1820_v61 = vmul.f32 %v1819_v59, %v2903_v38 }
 0x55f   : > { %1836 = vrot.lane.b32.xlu0 %v1820_v61, %s2383_s26  ;;  %1858 = vrot.lane.b32.xlu1 %v1820_v61, %s2384_s29  ;;  %v2931_v6 = vmul.f32 %v1820_v61, %v2928_v4 }
 0x560   : > { %1840 = vrot.lane.b32.xlu2 %v1820_v61, %s2385_s3 }
 0x567   : > { %1906 = vrot.lane.b32.xlu0 %v2903_v38, %s2386_s19  ;;  %1782 = vperm.xlu1 %2343, %v2369_v1  }
 0x568   : > { %1867 = vrot.lane.b32.xlu2 %v1820_v61, %s2387_s18 }
 0x56f   : > { %1928 = vrot.lane.b32.xlu0 %v2903_v38, %s2388_s23  ;;  %1831 = vrot.lane.b32.xlu1 %v2931_v6, %s2388_s23 }
 0x570   : > { %1915 = vrot.lane.b32.xlu2 %v2903_v38, %s2389_s24  ;;  %2345 = vset.pattern.permute.xlu1 %v2381_v41 }
 0x577   : > { %1613 = vrot.lane.b32.xlu0 %v2928_v4, %s2388_s23 }
 0x578   : > { %1892 = vrot.lane.b32.xlu2 %v1820_v61, %s2390_s4 }
 0x57f   : > { %1623 = vrot.lane.b32.xlu0 %v2928_v4, %s2384_s29 }
 0x580   : > { %1880 = vrot.lane.b32.xlu2 %v1820_v61, %s2388_s23 }
 0x587   : > { %1902 = vrot.lane.b32.xlu0 %v2903_v38, %s2384_s29 }
 0x588   : > { %1609 = vrot.lane.b32.xlu2 %v2928_v4, %s2383_s26 }
 0x58f   : > { %1635 = vrot.lane.b32.xlu0 %v2954_v50, %s2384_s29 }
 0x590   : > { %1602 = vrot.lane.b32.xlu2 %v2954_v50, %s2383_s26 }
 0x597   : > { %1823 = vrot.lane.b32.xlu0 %v2931_v6, %s2383_s26 }
 0x598   : > { %1827 = vrot.lane.b32.xlu2 %v2931_v6, %s2384_s29 }
 0x5ba   : > { %v1841_v5 = vpop.permute.xlu2 %1840 }
 0x5bb   : > { %v1843_v8 = vmul.f32 %v1841_v5, %v2928_v4 }
 0x5bd   : > { %1845 = vrot.lane.b32.xlu0 %v1843_v8, %s2383_s26 }
 0x5c2   : > { %v1868_v16 = vpop.permute.xlu2 %1867 }
 0x5c3   : > { %v1870_v17 = vmul.f32 %v1868_v16, %v2928_v4 }
 0x5c5   : > { %1872 = vrot.lane.b32.xlu0 %v1870_v17, %s2384_s29 }
 0x5ca   : > { %v2980_v18 = vpop.permute.xlu2 %1915 }
 0x5cd   : > { %1888 = vrot.lane.b32.xlu0 %v1843_v8, %s2384_s29 }
 0x5d1   : > { %v1859_v20 = vpop.permute.xlu1 %1858  ;;  %v1837_v21 = vpop.permute.xlu0 %1836 }
 0x5d2   : > { %v2984_v22 = vmul.f32 %v1859_v20, %v2928_v4  ;;  %v1893_v23 = vpop.permute.xlu2 %1892  ;;  %v2987_v24 = vmul.f32 %v1837_v21, %v2928_v4 }
 0x5d3   : > { %v1895_v28 = vmul.f32 %v1893_v23, %v2928_v4  ;;  %v1514_v23 = vpop.f32.mrf.mxu3 }
 0x5d4   : > { %1863 = vrot.lane.b32.xlu1 %v2984_v22, %s2383_s26  ;;  %1850 = vrot.lane.b32.xlu2 %v2987_v24, %s2384_s29 }
 0x5d9   : > { %v2993_v25 = vpop.permute.xlu0 %1906  ;;  %v3025_v48 = vpop.permute.xlu1 %1782 }
 0x5da   : > { %v2995_v26 = vpop.permute.xlu2 %1880 }
 0x5dc   : > { %1884 = vrot.lane.b32.xlu1 %v2987_v24, %s2383_s26  ;;  %1876 = vrot.lane.b32.xlu2 %v1870_v17, %s2388_s23 }
 0x5e1   : > { %v3000_v27 = vpop.permute.xlu0 %1928  ;;  %v1832_v56 = vpop.permute.xlu1 %1831 }
 0x5e2   : > { %v1610_v29 = vpop.permute.xlu2 %1609 }
 0x5e3   : > { %v1612_v39 = vmul.f32 %v1610_v29, %v2928_v4 }
 0x5e4   : > { %1854 = vrot.lane.b32.xlu1 %v1843_v8, %s2388_s23  ;;  %1897 = vrot.lane.b32.xlu2 %v1895_v28, %s2388_s23 }
 0x5e9   : > { %v1614_v30 = vpop.permute.xlu0 %1613 }
 0x5ea   : > { %v1603_v31 = vpop.permute.xlu2 %1602  ;;  %v1616_v32 = vmul.f32 %v1614_v30, %v2928_v4 }
 0x5eb   : > { %v1605_v33 = vadd.f32 %v1603_v31, %v2954_v50 }
 0x5ec   : > { %1618 = vrot.lane.b32.xlu2 %v1616_v32, %s2385_s3 }
 0x5ed   : > { %v1606_v34 = vmul.f32 2.0, %v1605_v33  ;;  %v1883_v33 = vmul.f32 %v2995_v26, %v2928_v4 }
 0x5ef   : > { %v3008_v35 = vsub.f32 1.0, %v1606_v34 }
 0x5f1   : > { %1656 = vperm.xlu0 %2342, %v3008_v35   ;;  %v1624_v36 = vpop.permute.xlu0 %1623 }
 0x5f2   : > { %v1626_v37 = vmul.f32 %v1624_v36, %v2928_v4  ;;  %v1828_v42 = vpop.permute.xlu2 %1827  ;;  %v1580_v36 = vpop.f32.mrf.mxu3 }
 0x5f4   : > { %1628 = vrot.lane.b32.xlu2 %v1626_v37, %s2385_s3 }
 0x5f9   : > { %v1903_v38 = vpop.permute.xlu0 %1902 }
 0x5fa   : > { %v3015_v40 = vmul.f32 %v1903_v38, %v3008_v35 }
 0x5fc   : > { %1642 = vrot.lane.b32.xlu2 %v1612_v39, %s2387_s18 }
 0x601   : > { %v3023_v47 = vpop.permute.xlu0 %1635 }
 0x604   : > { %1709 = vperm.xlu2 %2344, %v3008_v35  }
 0x609   : > { %v1824_v55 = vpop.permute.xlu0 %1823 }
 0x60a   : > { %v1826_v28 = vsub.f32 %v2931_v6, %v1824_v55  ;;  %v2361_v6 = vld [vmem:[%s3211_s7] ss:$0 sm:$0xff] }
 0x60b   : > { %v1515_v26 = vadd.f32 %v2361_v6, %v1514_v23 }
 0x60c   : > { %v1830_v31 = vsub.f32 %v1826_v28, %v1828_v42 }
 0x60e   : > { %v1834_v38 = vsub.f32 %v1830_v31, %v1832_v56 }
 0x62e   : > { %v3019_v11 = vpop.permute.xlu2 %1850 }
 0x62f   : > { %v1846_v1 = vpop.permute.xlu0 %1845 }
 0x636   : > { %v3021_v46 = vpop.permute.xlu2 %1876 }
 0x637   : > { %v1873_v30 = vpop.permute.xlu0 %1872 }
 0x63e   : > { %v1898_v12 = vpop.permute.xlu2 %1897 }
 0x63f   : > { %v1889_v4 = vpop.permute.xlu0 %1888 }
 0x646   : > { %v1619_v49 = vpop.permute.xlu2 %1618  ;;  %v1864_v5 = vpop.permute.xlu1 %1863 }
 0x647   : > { %v1621_v51 = vsub.f32 %v1612_v39, %v1619_v49  ;;  %v1633_v52 = vadd.f32 %v1619_v49, %v1612_v39 }
 0x649   : > { %v1622_v53 = vmul.f32 2.0, %v1621_v51  ;;  %v3027_v54 = vmul.f32 2.0, %v1633_v52  ;;  %v1848_v51 = vadd.f32 %v1846_v1, %v2987_v24  ;;  %v1866_v24 = vsub.f32 %v2984_v22, %v1864_v5 }
 0x64b   : > { %1678 = vperm.xlu1 %2345, %v1622_v53   ;;  %1663 = vperm.xlu2 %2344, %v3027_v54   ;;  %v1909_v52 = vmul.f32 %v2993_v25, %v1622_v53  ;;  %v1875_v53 = vadd.f32 %v1873_v30, %v1866_v24 }
 0x64e   : > { %v1629_v57 = vpop.permute.xlu2 %1628  ;;  %v1885_v32 = vpop.permute.xlu1 %1884 }
 0x64f   : > { %v1631_v59 = vadd.f32 %v1629_v57, %v1626_v37  ;;  %v1647_v61 = vsub.f32 %v1626_v37, %v1629_v57  ;;  %v1887_v37 = vadd.f32 %v1885_v32, %v1883_v33  ;;  %v1853_v57 = vadd.f32 %v3019_v11, %v1848_v51 }
 0x651   : > { %v1632_v62 = vmul.f32 2.0, %v1631_v59  ;;  %v3030_v0 = vmul.f32 2.0, %v1647_v61  ;;  %v1891_v42 = vsub.f32 %v1887_v37, %v1889_v4  ;;  %v1638_v61 = vadd.f32 %v3023_v47, %v2954_v50 }
 0x653   : > { %1670 = vperm.xlu2 %2344, %v3030_v0   ;;  %v1918_v3 = vmul.f32 %v2980_v18, %v1632_v62  ;;  %2348 = vset.pattern.permute.xlu1 %v2380_v15  ;;  %v1900_v55 = vadd.f32 %v1898_v12, %v1891_v42  ;;  %v1639_v12 = vmul.f32 2.0, %v1638_v61  ;;  %v1941_v23 = vmul.f32 %v3000_v27, %v3030_v0 }
 0x655   : > { %1920 = vrot.lane.b32.xlu1 %v1918_v3, %s2385_s3 }
 0x656   : > { %v1643_v8 = vpop.permute.xlu2 %1642  ;;  %v1855_v56 = vpop.permute.xlu1 %1854 }
 0x657   : > { %v1645_v16 = vsub.f32 %v1612_v39, %v1643_v8  ;;  %v1649_v17 = vadd.f32 %v1643_v8, %v1612_v39  ;;  %v1581_v39 = vadd.f32 %v2361_v6, %v1580_v36  ;;  %v1857_v59 = vsub.f32 %v1853_v57, %v1855_v56 }
 0x658   : > { %v3080_v6 = vand.u32 127, %v1056_v19 }
 0x659   : > { %v1646_v20 = vmul.f32 2.0, %v1645_v16  ;;  %v1650_v21 = vmul.f32 2.0, %v1649_v17  ;;  %v3051_v49 = vsub.f32 %v1581_v39, %v1515_v26  ;;  %v1931_v16 = vmul.f32 %v3000_v27, %v3027_v54 }
 0x65a   : > { %vm1653_vm0 = vcmp.eq.s32.totalorder %v3080_v6, 0  ;;  %vm1660_vm1 = vcmp.eq.s32.totalorder %v3080_v6, 1  ;;  %vm1667_vm2 = vcmp.eq.s32.totalorder %v3080_v6, 2  ;;  %vm1972_vm3 = vcmp.eq.s32.totalorder %v3080_v6, 3 }
 0x65b   : > { %2346 = vset.pattern.permute.xlu2 %v2382_v43  ;;  %1704 = vperm.xlu0 %2342, %v1646_v20   ;;  %v1934_v29 = vmul.f32 %v2993_v25, %v1646_v20  ;;  %v1942_v34 = vmul.f32 %v3000_v27, %v1650_v21  ;;  %vm1979_vm5 = vcmp.eq.s32.totalorder %v3080_v6, 4  ;;  %vm1993_vm6 = vcmp.eq.s32.totalorder %v3080_v6, 6 }
 0x65c   : > { %1690 = vperm.xlu2 %2346, %v1650_v21  }
 0x65d   : > { %1936 = vrot.lane.b32.xlu1 %v1934_v29, %s2383_s26  ;;  %v1948_v29 = vmul.f32 %v2980_v18, %v3008_v35 }
 0x65e   : > { %v1710_v50 = vpop.permute.xlu2 %1709 }
 0x663   : > { %1944 = vrot.lane.b32.xlu0 %v1942_v34, %s2383_s26  ;;  %v1657_v3 = vpop.permute.xlu0 %1656 }
 0x664   : > { %2347 = vset.pattern.permute.xlu2 %v2381_v41  ;;  %2349 = vset.pattern.permute.xlu0 %v2380_v15  ;;  %v1659_v18 = vsel %vm1653_vm0, %v1657_v3, 0.0 }
 0x665   : > { %1698 = vperm.xlu2 %2347, %v1632_v62   ;;  %1956 = vperm.xlu1 %2348, %v1834_v38   ;;  %v1640_v62 = vsub.f32 1.0, %v1639_v12 }
 0x66b   : > { %1924 = vrot.lane.b32.xlu0 %v3051_v49, %s2387_s18 }
 0x66d   : > { %1911 = vrot.lane.b32.xlu2 %v1909_v52, %s2385_s3  ;;  %1975 = vperm.xlu1 %2348, %v1900_v55  }
 0x66e   : > { %2351 = vset.pattern.permute.xlu2 %v2380_v15  ;;  %v1879_v15 = vadd.f32 %v3021_v46, %v1875_v53 }
 0x673   : > { %1962 = vperm.xlu0 %2349, %v1857_v59  }
 0x675   : > { %1950 = vrot.lane.b32.xlu2 %v3051_v49, %s2383_s26  ;;  %2353 = vset.pattern.permute.xlu1 %v2381_v41 }
 0x67b   : > { %2350 = vset.pattern.permute.xlu0 %v2381_v41  ;;  %v1932_v41 = vmul.f32 %v2993_v25, %v1640_v62 }
 0x67c   : > { %1684 = vperm.xlu0 %2350, %v1640_v62  }
 0x67d   : > { %1968 = vperm.xlu2 %2351, %v1879_v15   ;;  %v1933_v17 = vadd.f32 %v1932_v41, %v1931_v16 }
 0x684   : > { %1750 = vperm.xlu0 %2350, %v2915_v45  }
 0x685   : > { %2352 = vset.pattern.permute.xlu2 %v2382_v43 }
 0x6a5   : > { %v1664_v22 = vpop.permute.xlu2 %1663 }
 0x6ad   : > { %v1671_v11 = vpop.permute.xlu2 %1670 }
 0x6b6   : > { %v1691_v47 = vpop.permute.xlu2 %1690 }
 0x6bd   : > { %v1679_v1 = vpop.permute.xlu1 %1678 }
 0x6be   : > { %v1681_v4 = vsel %vm1653_vm0, %v1679_v1, 0.0 }
 0x6bf   : > { %v1699_v5 = vpop.permute.xlu2 %1698 }
 0x6c0   : > { %v1701_v35 = vsel %vm1653_vm0, %v1699_v5, 0.0 }
 0x6c7   : > { %v1921_v8 = vpop.permute.xlu1 %1920  ;;  %v1912_v20 = vpop.permute.xlu2 %1911 }
 0x6c8   : > { %v1914_v54 = vadd.f32 %v1912_v20, %v3015_v40  ;;  %v1666_v40 = vsel %vm1660_vm1, %v1664_v22, %v1659_v18 }
 0x6c9   : > { %v1673_v0 = vsel %vm1667_vm2, %v1671_v11, %v1666_v40  ;;  %v1716_v11 = vrot.slane %v3051_v49, 1 }
 0x6ca   : > { %v1923_v33 = vadd.f32 %v1921_v8, %v1914_v54  ;;  %v1675_v38 = vrot.slane %v1673_v0, 1  ;;  %v1733_v39 = vperm.slane %v1673_v0, 0 }
 0x6cc   : > { %v1734_v52 = vperm.slane %v1675_v38, 0  ;;  %v1737_v61 = vmul.f32 %v1733_v39, %v2913_v44  ;;  %v1738_v12 = vmul.f32 %v1733_v39, %v2941_v7 }
 0x6cd   : > { %v1705_v46 = vpop.permute.xlu0 %1704 }
 0x6ce   : > { %v1707_v19 = vsel %vm1660_vm1, %v1705_v46, %v1701_v35  ;;  %v1739_v7 = vmul.f32 %v1734_v52, %v2919_v10 }
 0x6cf   : > { %v1937_v21 = vpop.permute.xlu1 %1936  ;;  %v1951_v25 = vpop.permute.xlu2 %1950  ;;  %v1712_v37 = vsel %vm1667_vm2, %v1710_v50, %v1707_v19  ;;  %v1740_v50 = vmul.f32 %v1734_v52, %v2974_v14 }
 0x6d0   : > { %v1939_v45 = vadd.f32 %v1937_v21, %v1933_v17  ;;  %v1714_v26 = vrot.slane %v1712_v37, 1  ;;  %v1785_v55 = vperm.slane %v1712_v37, 0 }
 0x6d2   : > { %v1940_v43 = vadd.f32 %v1939_v45, %v3051_v49  ;;  %v1786_v24 = vperm.slane %v1714_v26, 0  ;;  %v1789_v22 = vmul.f32 %v1785_v55, %v2968_v63 }
 0x6d4   : > { %1989 = vperm.xlu1 %2353, %v1940_v43   ;;  %v1792_v5 = vmul.f32 %v1786_v24, %v3025_v48 }
 0x6d5   : > { %v1945_v28 = vpop.permute.xlu0 %1944 }
 0x6d6   : > { %v1947_v30 = vadd.f32 %v1945_v28, %v1941_v23 }
 0x6d7   : > { %v1969_v21 = vpop.permute.xlu2 %1968 }
 0x6d8   : > { %v1949_v31 = vadd.f32 %v1948_v29, %v1947_v30 }
 0x6da   : > { %v1953_v32 = vadd.f32 %v1951_v25, %v1949_v31 }
 0x6dc   : > { %1996 = vperm.xlu0 %2350, %v1953_v32  }
 0x6dd   : > { %v1925_v34 = vpop.permute.xlu0 %1924 }
 0x6de   : > { %v1927_v36 = vadd.f32 %v1925_v34, %v1923_v33 }
 0x6e0   : > { %1982 = vperm.xlu2 %2352, %v1927_v36  }
 0x6e5   : > { %v1963_v27 = vpop.permute.xlu0 %1962 }
 0x6ee   : > { %v1685_v42 = vpop.permute.xlu0 %1684 }
 0x6ef   : > { %v1687_v51 = vsel %vm1660_vm1, %v1685_v42, %v1681_v4 }
 0x6f0   : > { %v1693_v56 = vsel %vm1667_vm2, %v1691_v47, %v1687_v51  ;;  %v1790_v47 = vmul.f32 %v1785_v55, %v2978_v9  ;;  %v1791_v9 = vmul.f32 %v1786_v24, %v2970_v2  ;;  %v1957_v2 = vpop.permute.xlu1 %1956 }
 0x6f1   : > { %v1695_v57 = vrot.slane %v1693_v56, 1  ;;  %v1757_v59 = vperm.slane %v1693_v56, 0  ;;  %v1959_v43 = vsel %vm1653_vm0, %v1957_v2, 0.0 }
 0x6f2   : > { %v1965_v23 = vsel %vm1660_vm1, %v1963_v27, %v1959_v43 }
 0x6f3   : > { %v1758_v53 = vperm.slane %v1695_v57, 0  ;;  %v1761_v62 = vmul.f32 %v1757_v59, %v2950_v13  ;;  %v1762_v15 = vmul.f32 %v1757_v59, %v2960_v58  ;;  %v1797_v13 = vperm.slane %v3051_v49, 0 }
 0x6f4   : > { %v1971_v28 = vsel %vm1667_vm2, %v1969_v21, %v1965_v23 }
 0x6f5   : > { %v1764_v1 = vmul.f32 %v1758_v53, %v2966_v60  ;;  %v1765_v3 = vadd.f32 %v1761_v62, %v1737_v61  ;;  %v1766_v44 = vadd.f32 %v1762_v15, %v1738_v12  ;;  %v1798_v60 = vperm.slane %v1716_v11, 0 }
 0x6f6   : > { %v1751_v8 = vpop.permute.xlu0 %1750 }
 0x6f7   : > { %v1768_v58 = vadd.f32 %v1764_v1, %v1740_v50  ;;  %v1793_v14 = vadd.f32 %v1789_v22, %v1765_v3  ;;  %v1794_v63 = vadd.f32 %v1790_v47, %v1766_v44  ;;  %v1763_v16 = vmul.f32 %v1758_v53, %v1751_v8 }
 0x6f8   : > { %v1976_v45 = vpop.permute.xlu1 %1975 }
 0x6f9   : > { %v1796_v41 = vadd.f32 %v1792_v5, %v1768_v58  ;;  %v1801_v46 = vadd.f32 %v1797_v13, %v1793_v14  ;;  %v1802_v17 = vadd.f32 %v1797_v13, %v1794_v63  ;;  %v1767_v48 = vadd.f32 %v1763_v16, %v1739_v7 }
 0x6fa   : > { %v1978_v54 = vsel %vm1972_vm3, %v1976_v45, %v1971_v28 }
 0x6fb   : > { %v1804_v20 = vadd.f32 %v1798_v60, %v1796_v41  ;;  %2000 = vst.msk [vmem:[#allocation2] sm:$0xff] %vm896_vm4, %v1801_v46  ;;  %v1795_v10 = vadd.f32 %v1791_v9, %v1767_v48 }
 0x6fc   : > { %2001 = vst.msk [vmem:[#allocation2 + $0x8] sm:$0xff] %vm896_vm4, %v1802_v17 }
 0x6fd   : > { %2003 = vst.msk [vmem:[#allocation2 + $0x18] sm:$0xff] %vm896_vm4, %v1804_v20  ;;  %v1803_v49 = vadd.f32 %v1798_v60, %v1795_v10 }
 0x6fe   : > { %2006 = vst.msk [vmem:[%s2585_s13] sm:$0xff] %vm896_vm4, %v1801_v46 }
 0x6ff   : > { %2007 = vst.msk [vmem:[%s2585_s13 + $0x8] sm:$0xff] %vm896_vm4, %v1802_v17 }
 0x700   : > { %2009 = vst.msk [vmem:[%s2585_s13 + $0x18] sm:$0xff] %vm896_vm4, %v1804_v20 }
 0x701   : > { %2002 = vst.msk [vmem:[#allocation2 + $0x10] sm:$0xff] %vm896_vm4, %v1803_v49 }
 0x702   : > { %2008 = vst.msk [vmem:[%s2585_s13 + $0x10] sm:$0xff] %vm896_vm4, %v1803_v49  ;;  %vm1986_vm4 = vcmp.eq.s32.totalorder %v3080_v6, 5 }
 0x73a   : > { %v1983_v29 = vpop.permute.xlu2 %1982 }
 0x73b   : > { %v1985_v31 = vsel %vm1979_vm5, %v1983_v29, %v1978_v54 }
 0x746   : > { %v1990_v30 = vpop.permute.xlu1 %1989 }
 0x747   : > { %v1992_v25 = vsel %vm1986_vm4, %v1990_v30, %v1985_v31 }
 0x74e   : > { %v1997_v32 = vpop.permute.xlu0 %1996 }
 0x74f   : > { %v1999_v33 = vsel %vm1993_vm6, %v1997_v32, %v1992_v25 }
 0x750   : > { %2005 = vst.msk [vmem:[#allocation3] sm:$0x3] %vm2004_vm7, %v1999_v33 }
 0x751   : > { %2010 = vst.msk [vmem:[%s2591_s1] sm:$0x3] %vm2004_vm7, %v1999_v33 }
 0x752 PF: > { %s3212_s13 = sld [smem:[#allocation4_spill]] }
 0x758   : > { %s30_s0 = sadd.s32 1, %s3212_s13  }
 0x759   : > { %p27_p5 = scmp.ge.s32.totalorder %s30_s0, 6  }
 0x75b   :  { %29 = sbr.rel (!%p27_p5) target bundleno = 15 (0xf), region = 183 }

</bundles_post_ra>
